<compile_context>
chip_gen: v5e
topology: v5e:2x2
jax: 0.10.0
libtpu: 0.0.40
codegen_flags: <defaults>
</compile_context>

<pallas_src>
import math

import jax
import jax.numpy as jnp
from jax import lax
from jax.experimental import pallas as pl
from jax.experimental.pallas import tpu as pltpu  # noqa: F401

# ---- small synthetic ViT config (shapes consistent with the module) ----
IMG = 16          # img_size
PATCH = 8         # patch_size
C = 3             # in_chans
D = 32            # embed_dim  (self.out_dim)
HEADS = 2
HD = D // HEADS
DEPTH = 2
MLP = 4 * D
B = 2
NP = (IMG // PATCH) ** 2      # 4 patches
N = NP + 1                    # 5 tokens (cls + patches)
T = B * N                     # 10 flattened tokens
PDIM = C * PATCH * PATCH      # 192
EPS = 1e-6                    # timm ViT LayerNorm eps
NEG = -1e30                   # additive mask value (finite: avoids inf-inf NaN)


def _layernorm(x, w, b):
    mu = jnp.mean(x, axis=-1, keepdims=True)
    var = jnp.mean((x - mu) ** 2, axis=-1, keepdims=True)
    return (x - mu) * lax.rsqrt(var + EPS) * w + b


def _erf(x):
    # Abramowitz & Stegun 7.1.26 (|err| < 1.5e-7): exact-erf GELU semantics at f32
    # accuracy using only exp / mul / add / select (always lowerable in Mosaic).
    p = 0.3275911
    a1, a2, a3, a4, a5 = (0.254829592, -0.284496736, 1.421413741,
                          -1.453152027, 1.061405429)
    ax = jnp.abs(x)
    t = 1.0 / (1.0 + p * ax)
    poly = ((((a5 * t + a4) * t + a3) * t + a2) * t + a1) * t
    y = 1.0 - poly * jnp.exp(-ax * ax)
    return jnp.where(x >= 0.0, y, -y)


def _gelu(x):
    # matches torch.nn.GELU default (erf-based)
    return 0.5 * x * (1.0 + _erf(x * (1.0 / math.sqrt(2.0))))


_BLOCK_KEYS = ('ln1_w', 'ln1_b', 'qkv_w', 'qkv_b', 'proj_w', 'proj_b', 'ls1',
               'ln2_w', 'ln2_b', 'fc1_w', 'fc1_b', 'fc2_w', 'fc2_b', 'ls2')


# ----------------------------- fused Pallas kernel -----------------------------

def vit_fused_kernel(patches_ref, posbias_ref, mask_ref, patch_w_ref,
                     ln1w_ref, ln1b_ref, qkvw_ref, qkvb_ref, projw_ref, projb_ref,
                     ls1_ref, ln2w_ref, ln2b_ref, fc1w_ref, fc1b_ref, fc2w_ref,
                     fc2b_ref, ls2_ref, normw_ref, normb_ref, out_ref):
    # ---- patch embed (conv stride=P as one [T, C*P*P] @ [C*P*P, D] matmul).
    # Row b*N is a zero patch row; posbias carries cls_token+pos[0] there and
    # patch_b+pos[1:] on the patch rows, so this one matmul+add builds the sequence.
    x = (jnp.dot(patches_ref[...], patch_w_ref[...],
                 preferred_element_type=jnp.float32) + posbias_ref[...])     # [T, D]
    mask = mask_ref[...]                                                     # [T, T]

    # ---- transformer blocks: static unroll, weights stacked [DEPTH, ...] ----
    for d in range(DEPTH):
        # --- attention: batch-flattened with block-diagonal additive mask ---
        h = _layernorm(x, ln1w_ref[d], ln1b_ref[d])
        # q columns of qkv_w / qkv_b already carry the 1/sqrt(HD) scale (packed).
        qkv = (jnp.dot(h, qkvw_ref[d],
                       preferred_element_type=jnp.float32) + qkvb_ref[d])    # [T, 3D]
        projw = projw_ref[d]                                                 # [D, D]
        acc = projb_ref[d]                                                   # [1, D]
        for hi in range(HEADS):                                              # static unroll
            qh = qkv[:, hi * HD:(hi + 1) * HD]                               # [T, HD]
            kh = qkv[:, D + hi * HD:D + (hi + 1) * HD]
            vh = qkv[:, 2 * D + hi * HD:2 * D + (hi + 1) * HD]
            # q @ k^T without explicit transpose (contract last dims)
            s = lax.dot_general(qh, kh, (((1,), (1,)), ((), ())),
                                preferred_element_type=jnp.float32) + mask   # [T, T]
            s = s - jnp.max(s, axis=-1, keepdims=True)
            e = jnp.exp(s)
            den = jnp.sum(e, axis=-1, keepdims=True)
            r = pl.reciprocal(den, approx=True)          # EUP slot
            r = r * (2.0 - den * r)                      # one Newton step -> f32 exact
            pmat = e * r
            oh = jnp.dot(pmat, vh, preferred_element_type=jnp.float32)       # [T, HD]
            # fold the head concat into per-head row blocks of proj_w
            acc = acc + jnp.dot(oh, projw[hi * HD:(hi + 1) * HD, :],
                                preferred_element_type=jnp.float32)
        # residual + LayerScale (DINOv2)
        x = x + acc * ls1_ref[d]

        # --- MLP (batch-flattened) ---
        h2 = _layernorm(x, ln2w_ref[d], ln2b_ref[d])
        h2 = jnp.dot(h2, fc1w_ref[d], preferred_element_type=jnp.float32) + fc1b_ref[d]
        h2 = _gelu(h2)
        h2 = jnp.dot(h2, fc2w_ref[d], preferred_element_type=jnp.float32) + fc2b_ref[d]
        x = x + h2 * ls2_ref[d]

    # ---- final LayerNorm; emit the cls row of each image ----
    y = _layernorm(x, normw_ref[...], normb_ref[...])
    for bi in range(B):
        out_ref[bi:bi + 1, :] = y[bi * N:bi * N + 1, :].astype(out_ref.dtype)


# ------------------------------ wrappers ------------------------------

def pack_params(params, batch):
    """Stack per-block weights along DEPTH, fold 1/sqrt(HD) into the q columns of qkv,
    fold cls_token / pos_embed / patch bias into one additive row bias, and build the
    block-diagonal additive attention mask."""
    stk = {k: jnp.stack([blk[k] for blk in params['blocks']], axis=0)
           for k in _BLOCK_KEYS}
    scale = 1.0 / math.sqrt(HD)
    stk['qkv_w'] = stk['qkv_w'].at[:, :, :D].multiply(scale)
    stk['qkv_b'] = stk['qkv_b'].at[:, :, :D].multiply(scale)

    row0 = params['cls_token'] + params['pos_embed'][0:1, :]            # cls row bias
    rows = params['patch_b'] + params['pos_embed'][1:, :]               # patch row bias
    posbias = jnp.tile(jnp.concatenate([row0, rows], axis=0), (batch, 1))  # [B*N, D]

    tok_batch = jnp.arange(batch * N) // N
    attn_mask = jnp.where(tok_batch[:, None] == tok_batch[None, :],
                          0.0, NEG).astype(jnp.float32)                 # [B*N, B*N]

    packed = dict(patch_w=params['patch_w'], posbias=posbias, attn_mask=attn_mask,
                  norm_w=params['norm_w'], norm_b=params['norm_b'])
    packed.update(stk)
    return packed


@jax.jit
def dinov2_vit_forward(x, packed):
    b = x.shape[0]
    assert b == B and x.shape[1:] == (C, IMG, IMG)
    # patchify (glue): NCHW -> [B, NP, C*P*P]; prepend a zero row per image (cls slot)
    p = x.reshape(b, C, IMG // PATCH, PATCH, IMG // PATCH, PATCH)
    p = p.transpose(0, 2, 4, 1, 3, 5).reshape(b, NP, PDIM)
    p = jnp.concatenate([jnp.zeros((b, 1, PDIM), x.dtype), p], axis=1)
    patches_ext = p.reshape(b * N, PDIM)

    return pl.pallas_call(
        vit_fused_kernel,
        out_shape=jax.ShapeDtypeStruct((b, D), jnp.float32),
    )(patches_ext, packed['posbias'], packed['attn_mask'], packed['patch_w'],
      *[packed[k] for k in _BLOCK_KEYS],
      packed['norm_w'], packed['norm_b'])


# --------------------------- deterministic init ---------------------------

def init_params(key):
    keys = jax.random.split(key, 3 + DEPTH)

    def rnd(k, shape, scale=0.02):
        return (scale * jax.random.normal(k, shape)).astype(jnp.float32)

    params = dict(
        patch_w=rnd(keys[0], (PDIM, D)),        # conv weight [D,C,P,P] pre-flattened
        patch_b=jnp.zeros((1, D), jnp.float32),
        cls_token=rnd(keys[1], (1, D)),
        pos_embed=rnd(keys[2], (N, D)),
        norm_w=jnp.ones((1, D), jnp.float32),
        norm_b=jnp.zeros((1, D), jnp.float32),
        blocks=[],
    )
    for d in range(DEPTH):
        bk = jax.random.split(keys[3 + d], 4)
        params['blocks'].append(dict(
            ln1_w=jnp.ones((1, D), jnp.float32), ln1_b=jnp.zeros((1, D), jnp.float32),
            qkv_w=rnd(bk[0], (D, 3 * D)), qkv_b=jnp.zeros((1, 3 * D), jnp.float32),
            proj_w=rnd(bk[1], (D, D)), proj_b=jnp.zeros((1, D), jnp.float32),
            ls1=jnp.full((1, D), 1e-5, jnp.float32),     # DINOv2 LayerScale init
            ln2_w=jnp.ones((1, D), jnp.float32), ln2_b=jnp.zeros((1, D), jnp.float32),
            fc1_w=rnd(bk[2], (D, MLP)), fc1_b=jnp.zeros((1, MLP), jnp.float32),
            fc2_w=rnd(bk[3], (MLP, D)), fc2_b=jnp.zeros((1, D), jnp.float32),
            ls2=jnp.full((1, D), 1e-5, jnp.float32),
        ))
    return params


if __name__ == "__main__":
    key = jax.random.PRNGKey(0)
    k_param, k_x = jax.random.split(key)
    params = init_params(k_param)
    packed = pack_params(params, B)

    # TODO(synk): pretrained timm weights / default_cfg mean-std normalization are
    # external data; weights are synthetic and normalization is the caller's job
    # (the PyTorch module's forward does not normalize either).
    x = jax.random.normal(k_x, (B, C, IMG, IMG), dtype=jnp.float32)

    emb = dinov2_vit_forward(x, packed)
    emb = jax.block_until_ready(emb)
    assert emb.shape == (B, D) and emb.dtype == jnp.float32
    assert bool(jnp.all(jnp.isfinite(emb)))
    print("KERNEL_OK")
</pallas_src>

<mosaic_0001>
module attributes {stable_mosaic.version = 11 : i64} {
  func.func @vit_fused_kernel(%arg0: memref<10x192xf32, #tpu.memory_space<vmem>>, %arg1: memref<10x32xf32, #tpu.memory_space<vmem>>, %arg2: memref<10x10xf32, #tpu.memory_space<vmem>>, %arg3: memref<192x32xf32, #tpu.memory_space<vmem>>, %arg4: memref<2x1x32xf32, #tpu.memory_space<vmem>>, %arg5: memref<2x1x32xf32, #tpu.memory_space<vmem>>, %arg6: memref<2x32x96xf32, #tpu.memory_space<vmem>>, %arg7: memref<2x1x96xf32, #tpu.memory_space<vmem>>, %arg8: memref<2x32x32xf32, #tpu.memory_space<vmem>>, %arg9: memref<2x1x32xf32, #tpu.memory_space<vmem>>, %arg10: memref<2x1x32xf32, #tpu.memory_space<vmem>>, %arg11: memref<2x1x32xf32, #tpu.memory_space<vmem>>, %arg12: memref<2x1x32xf32, #tpu.memory_space<vmem>>, %arg13: memref<2x32x128xf32, #tpu.memory_space<vmem>>, %arg14: memref<2x1x128xf32, #tpu.memory_space<vmem>>, %arg15: memref<2x128x32xf32, #tpu.memory_space<vmem>>, %arg16: memref<2x1x32xf32, #tpu.memory_space<vmem>>, %arg17: memref<2x1x32xf32, #tpu.memory_space<vmem>>, %arg18: memref<1x32xf32, #tpu.memory_space<vmem>>, %arg19: memref<1x32xf32, #tpu.memory_space<vmem>>, %arg20: memref<2x32xf32, #tpu.memory_space<vmem>>) attributes {dimension_semantics = [], scalar_prefetch = 0 : i64, scratch_operands = 0 : i64, tpu.core_type = #tpu.core_type<tc>} {
    %c0 = arith.constant 0 : index
    %c0_0 = arith.constant 0 : index
    %0 = vector.load %arg0[%c0, %c0_0] : memref<10x192xf32, #tpu.memory_space<vmem>>, vector<10x192xf32>
    %c0_1 = arith.constant 0 : index
    %c0_2 = arith.constant 0 : index
    %1 = vector.load %arg3[%c0_1, %c0_2] : memref<192x32xf32, #tpu.memory_space<vmem>>, vector<192x32xf32>
    %cst = arith.constant dense<0.000000e+00> : vector<10x32xf32>
    %2 = tpu.matmul %0, %1, %cst {dimension_numbers = #tpu.dot_dimension_numbers<[1], [0], [0], [1], [0, 0, 1, 1], [], []>} : vector<10x192xf32>, vector<192x32xf32>, vector<10x32xf32> -> vector<10x32xf32>
    %c0_3 = arith.constant 0 : index
    %c0_4 = arith.constant 0 : index
    %3 = vector.load %arg1[%c0_3, %c0_4] : memref<10x32xf32, #tpu.memory_space<vmem>>, vector<10x32xf32>
    %4 = arith.addf %2, %3 : vector<10x32xf32>
    %c0_5 = arith.constant 0 : index
    %c0_6 = arith.constant 0 : index
    %5 = vector.load %arg2[%c0_5, %c0_6] : memref<10x10xf32, #tpu.memory_space<vmem>>, vector<10x10xf32>
    %c0_7 = arith.constant 0 : index
    %c0_8 = arith.constant 0 : index
    %c0_9 = arith.constant 0 : index
    %6 = vector.load %arg4[%c0_7, %c0_8, %c0_9] : memref<2x1x32xf32, #tpu.memory_space<vmem>>, vector<1x1x32xf32>
    %7 = vector.shape_cast %6 : vector<1x1x32xf32> to vector<1x32xf32>
    %c0_10 = arith.constant 0 : index
    %c0_11 = arith.constant 0 : index
    %c0_12 = arith.constant 0 : index
    %8 = vector.load %arg5[%c0_10, %c0_11, %c0_12] : memref<2x1x32xf32, #tpu.memory_space<vmem>>, vector<1x1x32xf32>
    %9 = vector.shape_cast %8 : vector<1x1x32xf32> to vector<1x32xf32>
    %cst_13 = arith.constant dense<0.000000e+00> : vector<10xf32>
    %10 = vector.multi_reduction <add>, %4, %cst_13 [1] : vector<10x32xf32> to vector<10xf32>
    %11 = vector.shape_cast %10 : vector<10xf32> to vector<10x1xf32>
    %cst_14 = arith.constant 3.200000e+01 : f32
    %12 = vector.broadcast %cst_14 : f32 to vector<10x1xf32>
    %13 = arith.divf %11, %12 : vector<10x1xf32>
    %14 = vector.broadcast %13 : vector<10x1xf32> to vector<10x32xf32>
    %15 = arith.subf %4, %14 : vector<10x32xf32>
    %16 = arith.mulf %15, %15 : vector<10x32xf32>
    %cst_15 = arith.constant dense<0.000000e+00> : vector<10xf32>
    %17 = vector.multi_reduction <add>, %16, %cst_15 [1] : vector<10x32xf32> to vector<10xf32>
    %18 = vector.shape_cast %17 : vector<10xf32> to vector<10x1xf32>
    %cst_16 = arith.constant 3.200000e+01 : f32
    %19 = vector.broadcast %cst_16 : f32 to vector<10x1xf32>
    %20 = arith.divf %18, %19 : vector<10x1xf32>
    %21 = vector.broadcast %13 : vector<10x1xf32> to vector<10x32xf32>
    %22 = arith.subf %4, %21 : vector<10x32xf32>
    %cst_17 = arith.constant 9.99999997E-7 : f32
    %23 = vector.broadcast %cst_17 : f32 to vector<10x1xf32>
    %24 = arith.addf %20, %23 : vector<10x1xf32>
    %25 = math.rsqrt %24 : vector<10x1xf32>
    %26 = vector.broadcast %25 : vector<10x1xf32> to vector<10x32xf32>
    %27 = arith.mulf %22, %26 : vector<10x32xf32>
    %28 = vector.broadcast %7 : vector<1x32xf32> to vector<10x32xf32>
    %29 = arith.mulf %27, %28 : vector<10x32xf32>
    %30 = vector.broadcast %9 : vector<1x32xf32> to vector<10x32xf32>
    %31 = arith.addf %29, %30 : vector<10x32xf32>
    %c0_18 = arith.constant 0 : index
    %c0_19 = arith.constant 0 : index
    %c0_20 = arith.constant 0 : index
    %32 = vector.load %arg6[%c0_18, %c0_19, %c0_20] : memref<2x32x96xf32, #tpu.memory_space<vmem>>, vector<1x32x96xf32>
    %33 = vector.shape_cast %32 : vector<1x32x96xf32> to vector<32x96xf32>
    %cst_21 = arith.constant dense<0.000000e+00> : vector<10x96xf32>
    %34 = tpu.matmul %31, %33, %cst_21 {dimension_numbers = #tpu.dot_dimension_numbers<[1], [0], [0], [1], [0, 0, 1, 1], [], []>} : vector<10x32xf32>, vector<32x96xf32>, vector<10x96xf32> -> vector<10x96xf32>
    %c0_22 = arith.constant 0 : index
    %c0_23 = arith.constant 0 : index
    %c0_24 = arith.constant 0 : index
    %35 = vector.load %arg7[%c0_22, %c0_23, %c0_24] : memref<2x1x96xf32, #tpu.memory_space<vmem>>, vector<1x1x96xf32>
    %36 = vector.shape_cast %35 : vector<1x1x96xf32> to vector<1x96xf32>
    %37 = vector.broadcast %36 : vector<1x96xf32> to vector<10x96xf32>
    %38 = arith.addf %34, %37 : vector<10x96xf32>
    %c0_25 = arith.constant 0 : index
    %c0_26 = arith.constant 0 : index
    %c0_27 = arith.constant 0 : index
    %39 = vector.load %arg8[%c0_25, %c0_26, %c0_27] : memref<2x32x32xf32, #tpu.memory_space<vmem>>, vector<1x32x32xf32>
    %40 = vector.shape_cast %39 : vector<1x32x32xf32> to vector<32x32xf32>
    %c0_28 = arith.constant 0 : index
    %c0_29 = arith.constant 0 : index
    %c0_30 = arith.constant 0 : index
    %41 = vector.load %arg9[%c0_28, %c0_29, %c0_30] : memref<2x1x32xf32, #tpu.memory_space<vmem>>, vector<1x1x32xf32>
    %42 = vector.shape_cast %41 : vector<1x1x32xf32> to vector<1x32xf32>
    %43 = vector.extract_strided_slice %38 {offsets = [0, 0], sizes = [10, 16], strides = [1, 1]} : vector<10x96xf32> to vector<10x16xf32>
    %44 = vector.extract_strided_slice %38 {offsets = [0, 32], sizes = [10, 16], strides = [1, 1]} : vector<10x96xf32> to vector<10x16xf32>
    %45 = vector.extract_strided_slice %38 {offsets = [0, 64], sizes = [10, 16], strides = [1, 1]} : vector<10x96xf32> to vector<10x16xf32>
    %cst_31 = arith.constant dense<0.000000e+00> : vector<10x10xf32>
    %46 = tpu.matmul %43, %44, %cst_31 {dimension_numbers = #tpu.dot_dimension_numbers<[1], [1], [0], [0], [0, 0, 1, 0], [], []>} : vector<10x16xf32>, vector<10x16xf32>, vector<10x10xf32> -> vector<10x10xf32>
    %47 = arith.addf %46, %5 : vector<10x10xf32>
    %cst_32 = arith.constant dense<0xFF800000> : vector<10xf32>
    %48 = vector.multi_reduction <maximumf>, %47, %cst_32 [1] : vector<10x10xf32> to vector<10xf32>
    %49 = vector.shape_cast %48 : vector<10xf32> to vector<10x1xf32>
    %50 = vector.broadcast %49 : vector<10x1xf32> to vector<10x10xf32>
    %51 = arith.subf %47, %50 : vector<10x10xf32>
    %52 = math.exp %51 : vector<10x10xf32>
    %cst_33 = arith.constant dense<0.000000e+00> : vector<10xf32>
    %53 = vector.multi_reduction <add>, %52, %cst_33 [1] : vector<10x10xf32> to vector<10xf32>
    %54 = vector.shape_cast %53 : vector<10xf32> to vector<10x1xf32>
    %55 = tpu.reciprocal %54 {approx = true} : vector<10x1xf32> -> vector<10x1xf32>
    %56 = arith.mulf %54, %55 : vector<10x1xf32>
    %cst_34 = arith.constant 2.000000e+00 : f32
    %57 = vector.broadcast %cst_34 : f32 to vector<10x1xf32>
    %58 = arith.subf %57, %56 : vector<10x1xf32>
    %59 = arith.mulf %55, %58 : vector<10x1xf32>
    %60 = vector.broadcast %59 : vector<10x1xf32> to vector<10x10xf32>
    %61 = arith.mulf %52, %60 : vector<10x10xf32>
    %cst_35 = arith.constant dense<0.000000e+00> : vector<10x16xf32>
    %62 = tpu.matmul %61, %45, %cst_35 {dimension_numbers = #tpu.dot_dimension_numbers<[1], [0], [0], [1], [0, 0, 1, 1], [], []>} : vector<10x10xf32>, vector<10x16xf32>, vector<10x16xf32> -> vector<10x16xf32>
    %63 = vector.extract_strided_slice %40 {offsets = [0, 0], sizes = [16, 32], strides = [1, 1]} : vector<32x32xf32> to vector<16x32xf32>
    %cst_36 = arith.constant dense<0.000000e+00> : vector<10x32xf32>
    %64 = tpu.matmul %62, %63, %cst_36 {dimension_numbers = #tpu.dot_dimension_numbers<[1], [0], [0], [1], [0, 0, 1, 1], [], []>} : vector<10x16xf32>, vector<16x32xf32>, vector<10x32xf32> -> vector<10x32xf32>
    %65 = vector.broadcast %42 : vector<1x32xf32> to vector<10x32xf32>
    %66 = arith.addf %65, %64 : vector<10x32xf32>
    %67 = vector.extract_strided_slice %38 {offsets = [0, 16], sizes = [10, 16], strides = [1, 1]} : vector<10x96xf32> to vector<10x16xf32>
    %68 = vector.extract_strided_slice %38 {offsets = [0, 48], sizes = [10, 16], strides = [1, 1]} : vector<10x96xf32> to vector<10x16xf32>
    %69 = vector.extract_strided_slice %38 {offsets = [0, 80], sizes = [10, 16], strides = [1, 1]} : vector<10x96xf32> to vector<10x16xf32>
    %cst_37 = arith.constant dense<0.000000e+00> : vector<10x10xf32>
    %70 = tpu.matmul %67, %68, %cst_37 {dimension_numbers = #tpu.dot_dimension_numbers<[1], [1], [0], [0], [0, 0, 1, 0], [], []>} : vector<10x16xf32>, vector<10x16xf32>, vector<10x10xf32> -> vector<10x10xf32>
    %71 = arith.addf %70, %5 : vector<10x10xf32>
    %cst_38 = arith.constant dense<0xFF800000> : vector<10xf32>
    %72 = vector.multi_reduction <maximumf>, %71, %cst_38 [1] : vector<10x10xf32> to vector<10xf32>
    %73 = vector.shape_cast %72 : vector<10xf32> to vector<10x1xf32>
    %74 = vector.broadcast %73 : vector<10x1xf32> to vector<10x10xf32>
    %75 = arith.subf %71, %74 : vector<10x10xf32>
    %76 = math.exp %75 : vector<10x10xf32>
    %cst_39 = arith.constant dense<0.000000e+00> : vector<10xf32>
    %77 = vector.multi_reduction <add>, %76, %cst_39 [1] : vector<10x10xf32> to vector<10xf32>
    %78 = vector.shape_cast %77 : vector<10xf32> to vector<10x1xf32>
    %79 = tpu.reciprocal %78 {approx = true} : vector<10x1xf32> -> vector<10x1xf32>
    %80 = arith.mulf %78, %79 : vector<10x1xf32>
    %cst_40 = arith.constant 2.000000e+00 : f32
    %81 = vector.broadcast %cst_40 : f32 to vector<10x1xf32>
    %82 = arith.subf %81, %80 : vector<10x1xf32>
    %83 = arith.mulf %79, %82 : vector<10x1xf32>
    %84 = vector.broadcast %83 : vector<10x1xf32> to vector<10x10xf32>
    %85 = arith.mulf %76, %84 : vector<10x10xf32>
    %cst_41 = arith.constant dense<0.000000e+00> : vector<10x16xf32>
    %86 = tpu.matmul %85, %69, %cst_41 {dimension_numbers = #tpu.dot_dimension_numbers<[1], [0], [0], [1], [0, 0, 1, 1], [], []>} : vector<10x10xf32>, vector<10x16xf32>, vector<10x16xf32> -> vector<10x16xf32>
    %87 = vector.extract_strided_slice %40 {offsets = [16, 0], sizes = [16, 32], strides = [1, 1]} : vector<32x32xf32> to vector<16x32xf32>
    %cst_42 = arith.constant dense<0.000000e+00> : vector<10x32xf32>
    %88 = tpu.matmul %86, %87, %cst_42 {dimension_numbers = #tpu.dot_dimension_numbers<[1], [0], [0], [1], [0, 0, 1, 1], [], []>} : vector<10x16xf32>, vector<16x32xf32>, vector<10x32xf32> -> vector<10x32xf32>
    %89 = arith.addf %66, %88 : vector<10x32xf32>
    %c0_43 = arith.constant 0 : index
    %c0_44 = arith.constant 0 : index
    %c0_45 = arith.constant 0 : index
    %90 = vector.load %arg10[%c0_43, %c0_44, %c0_45] : memref<2x1x32xf32, #tpu.memory_space<vmem>>, vector<1x1x32xf32>
    %91 = vector.shape_cast %90 : vector<1x1x32xf32> to vector<1x32xf32>
    %92 = vector.broadcast %91 : vector<1x32xf32> to vector<10x32xf32>
    %93 = arith.mulf %89, %92 : vector<10x32xf32>
    %94 = arith.addf %4, %93 : vector<10x32xf32>
    %c0_46 = arith.constant 0 : index
    %c0_47 = arith.constant 0 : index
    %c0_48 = arith.constant 0 : index
    %95 = vector.load %arg11[%c0_46, %c0_47, %c0_48] : memref<2x1x32xf32, #tpu.memory_space<vmem>>, vector<1x1x32xf32>
    %96 = vector.shape_cast %95 : vector<1x1x32xf32> to vector<1x32xf32>
    %c0_49 = arith.constant 0 : index
    %c0_50 = arith.constant 0 : index
    %c0_51 = arith.constant 0 : index
    %97 = vector.load %arg12[%c0_49, %c0_50, %c0_51] : memref<2x1x32xf32, #tpu.memory_space<vmem>>, vector<1x1x32xf32>
    %98 = vector.shape_cast %97 : vector<1x1x32xf32> to vector<1x32xf32>
    %cst_52 = arith.constant dense<0.000000e+00> : vector<10xf32>
    %99 = vector.multi_reduction <add>, %94, %cst_52 [1] : vector<10x32xf32> to vector<10xf32>
    %100 = vector.shape_cast %99 : vector<10xf32> to vector<10x1xf32>
    %cst_53 = arith.constant 3.200000e+01 : f32
    %101 = vector.broadcast %cst_53 : f32 to vector<10x1xf32>
    %102 = arith.divf %100, %101 : vector<10x1xf32>
    %103 = vector.broadcast %102 : vector<10x1xf32> to vector<10x32xf32>
    %104 = arith.subf %94, %103 : vector<10x32xf32>
    %105 = arith.mulf %104, %104 : vector<10x32xf32>
    %cst_54 = arith.constant dense<0.000000e+00> : vector<10xf32>
    %106 = vector.multi_reduction <add>, %105, %cst_54 [1] : vector<10x32xf32> to vector<10xf32>
    %107 = vector.shape_cast %106 : vector<10xf32> to vector<10x1xf32>
    %cst_55 = arith.constant 3.200000e+01 : f32
    %108 = vector.broadcast %cst_55 : f32 to vector<10x1xf32>
    %109 = arith.divf %107, %108 : vector<10x1xf32>
    %110 = vector.broadcast %102 : vector<10x1xf32> to vector<10x32xf32>
    %111 = arith.subf %94, %110 : vector<10x32xf32>
    %cst_56 = arith.constant 9.99999997E-7 : f32
    %112 = vector.broadcast %cst_56 : f32 to vector<10x1xf32>
    %113 = arith.addf %109, %112 : vector<10x1xf32>
    %114 = math.rsqrt %113 : vector<10x1xf32>
    %115 = vector.broadcast %114 : vector<10x1xf32> to vector<10x32xf32>
    %116 = arith.mulf %111, %115 : vector<10x32xf32>
    %117 = vector.broadcast %96 : vector<1x32xf32> to vector<10x32xf32>
    %118 = arith.mulf %116, %117 : vector<10x32xf32>
    %119 = vector.broadcast %98 : vector<1x32xf32> to vector<10x32xf32>
    %120 = arith.addf %118, %119 : vector<10x32xf32>
    %c0_57 = arith.constant 0 : index
    %c0_58 = arith.constant 0 : index
    %c0_59 = arith.constant 0 : index
    %121 = vector.load %arg13[%c0_57, %c0_58, %c0_59] : memref<2x32x128xf32, #tpu.memory_space<vmem>>, vector<1x32x128xf32>
    %122 = vector.shape_cast %121 : vector<1x32x128xf32> to vector<32x128xf32>
    %cst_60 = arith.constant dense<0.000000e+00> : vector<10x128xf32>
    %123 = tpu.matmul %120, %122, %cst_60 {dimension_numbers = #tpu.dot_dimension_numbers<[1], [0], [0], [1], [0, 0, 1, 1], [], []>} : vector<10x32xf32>, vector<32x128xf32>, vector<10x128xf32> -> vector<10x128xf32>
    %c0_61 = arith.constant 0 : index
    %c0_62 = arith.constant 0 : index
    %c0_63 = arith.constant 0 : index
    %124 = vector.load %arg14[%c0_61, %c0_62, %c0_63] : memref<2x1x128xf32, #tpu.memory_space<vmem>>, vector<1x1x128xf32>
    %125 = vector.shape_cast %124 : vector<1x1x128xf32> to vector<1x128xf32>
    %126 = vector.broadcast %125 : vector<1x128xf32> to vector<10x128xf32>
    %127 = arith.addf %123, %126 : vector<10x128xf32>
    %cst_64 = arith.constant 5.000000e-01 : f32
    %128 = vector.broadcast %cst_64 : f32 to vector<10x128xf32>
    %129 = arith.mulf %128, %127 : vector<10x128xf32>
    %cst_65 = arith.constant 0.707106769 : f32
    %130 = vector.broadcast %cst_65 : f32 to vector<10x128xf32>
    %131 = arith.mulf %127, %130 : vector<10x128xf32>
    %132 = math.absf %131 : vector<10x128xf32>
    %cst_66 = arith.constant 0.327591091 : f32
    %133 = vector.broadcast %cst_66 : f32 to vector<10x128xf32>
    %134 = arith.mulf %133, %132 : vector<10x128xf32>
    %cst_67 = arith.constant 1.000000e+00 : f32
    %135 = vector.broadcast %cst_67 : f32 to vector<10x128xf32>
    %136 = arith.addf %135, %134 : vector<10x128xf32>
    %cst_68 = arith.constant 1.000000e+00 : f32
    %137 = vector.broadcast %cst_68 : f32 to vector<10x128xf32>
    %138 = arith.divf %137, %136 : vector<10x128xf32>
    %cst_69 = arith.constant 1.06140542 : f32
    %139 = vector.broadcast %cst_69 : f32 to vector<10x128xf32>
    %140 = arith.mulf %139, %138 : vector<10x128xf32>
    %cst_70 = arith.constant -1.45315206 : f32
    %141 = vector.broadcast %cst_70 : f32 to vector<10x128xf32>
    %142 = arith.addf %140, %141 : vector<10x128xf32>
    %143 = arith.mulf %142, %138 : vector<10x128xf32>
    %cst_71 = arith.constant 1.42141378 : f32
    %144 = vector.broadcast %cst_71 : f32 to vector<10x128xf32>
    %145 = arith.addf %143, %144 : vector<10x128xf32>
    %146 = arith.mulf %145, %138 : vector<10x128xf32>
    %cst_72 = arith.constant -0.284496725 : f32
    %147 = vector.broadcast %cst_72 : f32 to vector<10x128xf32>
    %148 = arith.addf %146, %147 : vector<10x128xf32>
    %149 = arith.mulf %148, %138 : vector<10x128xf32>
    %cst_73 = arith.constant 0.254829586 : f32
    %150 = vector.broadcast %cst_73 : f32 to vector<10x128xf32>
    %151 = arith.addf %149, %150 : vector<10x128xf32>
    %152 = arith.mulf %151, %138 : vector<10x128xf32>
    %cst_74 = arith.constant 0.000000e+00 : f32
    %153 = vector.broadcast %cst_74 : f32 to vector<10x128xf32>
    %154 = arith.subf %153, %132 : vector<10x128xf32>
    %155 = arith.mulf %154, %132 : vector<10x128xf32>
    %156 = math.exp %155 : vector<10x128xf32>
    %157 = arith.mulf %152, %156 : vector<10x128xf32>
    %cst_75 = arith.constant 1.000000e+00 : f32
    %158 = vector.broadcast %cst_75 : f32 to vector<10x128xf32>
    %159 = arith.subf %158, %157 : vector<10x128xf32>
    %cst_76 = arith.constant 0.000000e+00 : f32
    %160 = vector.broadcast %cst_76 : f32 to vector<10x128xf32>
    %161 = arith.cmpf oge, %131, %160 : vector<10x128xf32>
    %cst_77 = arith.constant 0.000000e+00 : f32
    %162 = vector.broadcast %cst_77 : f32 to vector<10x128xf32>
    %163 = arith.subf %162, %159 : vector<10x128xf32>
    %164 = arith.select %161, %159, %163 : vector<10x128xi1>, vector<10x128xf32>
    %cst_78 = arith.constant 1.000000e+00 : f32
    %165 = vector.broadcast %cst_78 : f32 to vector<10x128xf32>
    %166 = arith.addf %165, %164 : vector<10x128xf32>
    %167 = arith.mulf %129, %166 : vector<10x128xf32>
    %c0_79 = arith.constant 0 : index
    %c0_80 = arith.constant 0 : index
    %c0_81 = arith.constant 0 : index
    %168 = vector.load %arg15[%c0_79, %c0_80, %c0_81] : memref<2x128x32xf32, #tpu.memory_space<vmem>>, vector<1x128x32xf32>
    %169 = vector.shape_cast %168 : vector<1x128x32xf32> to vector<128x32xf32>
    %cst_82 = arith.constant dense<0.000000e+00> : vector<10x32xf32>
    %170 = tpu.matmul %167, %169, %cst_82 {dimension_numbers = #tpu.dot_dimension_numbers<[1], [0], [0], [1], [0, 0, 1, 1], [], []>} : vector<10x128xf32>, vector<128x32xf32>, vector<10x32xf32> -> vector<10x32xf32>
    %c0_83 = arith.constant 0 : index
    %c0_84 = arith.constant 0 : index
    %c0_85 = arith.constant 0 : index
    %171 = vector.load %arg16[%c0_83, %c0_84, %c0_85] : memref<2x1x32xf32, #tpu.memory_space<vmem>>, vector<1x1x32xf32>
    %172 = vector.shape_cast %171 : vector<1x1x32xf32> to vector<1x32xf32>
    %173 = vector.broadcast %172 : vector<1x32xf32> to vector<10x32xf32>
    %174 = arith.addf %170, %173 : vector<10x32xf32>
    %c0_86 = arith.constant 0 : index
    %c0_87 = arith.constant 0 : index
    %c0_88 = arith.constant 0 : index
    %175 = vector.load %arg17[%c0_86, %c0_87, %c0_88] : memref<2x1x32xf32, #tpu.memory_space<vmem>>, vector<1x1x32xf32>
    %176 = vector.shape_cast %175 : vector<1x1x32xf32> to vector<1x32xf32>
    %177 = vector.broadcast %176 : vector<1x32xf32> to vector<10x32xf32>
    %178 = arith.mulf %174, %177 : vector<10x32xf32>
    %179 = arith.addf %94, %178 : vector<10x32xf32>
    %c1 = arith.constant 1 : index
    %c0_89 = arith.constant 0 : index
    %c0_90 = arith.constant 0 : index
    %180 = vector.load %arg4[%c1, %c0_89, %c0_90] : memref<2x1x32xf32, #tpu.memory_space<vmem>>, vector<1x1x32xf32>
    %181 = vector.shape_cast %180 : vector<1x1x32xf32> to vector<1x32xf32>
    %c1_91 = arith.constant 1 : index
    %c0_92 = arith.constant 0 : index
    %c0_93 = arith.constant 0 : index
    %182 = vector.load %arg5[%c1_91, %c0_92, %c0_93] : memref<2x1x32xf32, #tpu.memory_space<vmem>>, vector<1x1x32xf32>
    %183 = vector.shape_cast %182 : vector<1x1x32xf32> to vector<1x32xf32>
    %cst_94 = arith.constant dense<0.000000e+00> : vector<10xf32>
    %184 = vector.multi_reduction <add>, %179, %cst_94 [1] : vector<10x32xf32> to vector<10xf32>
    %185 = vector.shape_cast %184 : vector<10xf32> to vector<10x1xf32>
    %cst_95 = arith.constant 3.200000e+01 : f32
    %186 = vector.broadcast %cst_95 : f32 to vector<10x1xf32>
    %187 = arith.divf %185, %186 : vector<10x1xf32>
    %188 = vector.broadcast %187 : vector<10x1xf32> to vector<10x32xf32>
    %189 = arith.subf %179, %188 : vector<10x32xf32>
    %190 = arith.mulf %189, %189 : vector<10x32xf32>
    %cst_96 = arith.constant dense<0.000000e+00> : vector<10xf32>
    %191 = vector.multi_reduction <add>, %190, %cst_96 [1] : vector<10x32xf32> to vector<10xf32>
    %192 = vector.shape_cast %191 : vector<10xf32> to vector<10x1xf32>
    %cst_97 = arith.constant 3.200000e+01 : f32
    %193 = vector.broadcast %cst_97 : f32 to vector<10x1xf32>
    %194 = arith.divf %192, %193 : vector<10x1xf32>
    %195 = vector.broadcast %187 : vector<10x1xf32> to vector<10x32xf32>
    %196 = arith.subf %179, %195 : vector<10x32xf32>
    %cst_98 = arith.constant 9.99999997E-7 : f32
    %197 = vector.broadcast %cst_98 : f32 to vector<10x1xf32>
    %198 = arith.addf %194, %197 : vector<10x1xf32>
    %199 = math.rsqrt %198 : vector<10x1xf32>
    %200 = vector.broadcast %199 : vector<10x1xf32> to vector<10x32xf32>
    %201 = arith.mulf %196, %200 : vector<10x32xf32>
    %202 = vector.broadcast %181 : vector<1x32xf32> to vector<10x32xf32>
    %203 = arith.mulf %201, %202 : vector<10x32xf32>
    %204 = vector.broadcast %183 : vector<1x32xf32> to vector<10x32xf32>
    %205 = arith.addf %203, %204 : vector<10x32xf32>
    %c1_99 = arith.constant 1 : index
    %c0_100 = arith.constant 0 : index
    %c0_101 = arith.constant 0 : index
    %206 = vector.load %arg6[%c1_99, %c0_100, %c0_101] : memref<2x32x96xf32, #tpu.memory_space<vmem>>, vector<1x32x96xf32>
    %207 = vector.shape_cast %206 : vector<1x32x96xf32> to vector<32x96xf32>
    %cst_102 = arith.constant dense<0.000000e+00> : vector<10x96xf32>
    %208 = tpu.matmul %205, %207, %cst_102 {dimension_numbers = #tpu.dot_dimension_numbers<[1], [0], [0], [1], [0, 0, 1, 1], [], []>} : vector<10x32xf32>, vector<32x96xf32>, vector<10x96xf32> -> vector<10x96xf32>
    %c1_103 = arith.constant 1 : index
    %c0_104 = arith.constant 0 : index
    %c0_105 = arith.constant 0 : index
    %209 = vector.load %arg7[%c1_103, %c0_104, %c0_105] : memref<2x1x96xf32, #tpu.memory_space<vmem>>, vector<1x1x96xf32>
    %210 = vector.shape_cast %209 : vector<1x1x96xf32> to vector<1x96xf32>
    %211 = vector.broadcast %210 : vector<1x96xf32> to vector<10x96xf32>
    %212 = arith.addf %208, %211 : vector<10x96xf32>
    %c1_106 = arith.constant 1 : index
    %c0_107 = arith.constant 0 : index
    %c0_108 = arith.constant 0 : index
    %213 = vector.load %arg8[%c1_106, %c0_107, %c0_108] : memref<2x32x32xf32, #tpu.memory_space<vmem>>, vector<1x32x32xf32>
    %214 = vector.shape_cast %213 : vector<1x32x32xf32> to vector<32x32xf32>
    %c1_109 = arith.constant 1 : index
    %c0_110 = arith.constant 0 : index
    %c0_111 = arith.constant 0 : index
    %215 = vector.load %arg9[%c1_109, %c0_110, %c0_111] : memref<2x1x32xf32, #tpu.memory_space<vmem>>, vector<1x1x32xf32>
    %216 = vector.shape_cast %215 : vector<1x1x32xf32> to vector<1x32xf32>
    %217 = vector.extract_strided_slice %212 {offsets = [0, 0], sizes = [10, 16], strides = [1, 1]} : vector<10x96xf32> to vector<10x16xf32>
    %218 = vector.extract_strided_slice %212 {offsets = [0, 32], sizes = [10, 16], strides = [1, 1]} : vector<10x96xf32> to vector<10x16xf32>
    %219 = vector.extract_strided_slice %212 {offsets = [0, 64], sizes = [10, 16], strides = [1, 1]} : vector<10x96xf32> to vector<10x16xf32>
    %cst_112 = arith.constant dense<0.000000e+00> : vector<10x10xf32>
    %220 = tpu.matmul %217, %218, %cst_112 {dimension_numbers = #tpu.dot_dimension_numbers<[1], [1], [0], [0], [0, 0, 1, 0], [], []>} : vector<10x16xf32>, vector<10x16xf32>, vector<10x10xf32> -> vector<10x10xf32>
    %221 = arith.addf %220, %5 : vector<10x10xf32>
    %cst_113 = arith.constant dense<0xFF800000> : vector<10xf32>
    %222 = vector.multi_reduction <maximumf>, %221, %cst_113 [1] : vector<10x10xf32> to vector<10xf32>
    %223 = vector.shape_cast %222 : vector<10xf32> to vector<10x1xf32>
    %224 = vector.broadcast %223 : vector<10x1xf32> to vector<10x10xf32>
    %225 = arith.subf %221, %224 : vector<10x10xf32>
    %226 = math.exp %225 : vector<10x10xf32>
    %cst_114 = arith.constant dense<0.000000e+00> : vector<10xf32>
    %227 = vector.multi_reduction <add>, %226, %cst_114 [1] : vector<10x10xf32> to vector<10xf32>
    %228 = vector.shape_cast %227 : vector<10xf32> to vector<10x1xf32>
    %229 = tpu.reciprocal %228 {approx = true} : vector<10x1xf32> -> vector<10x1xf32>
    %230 = arith.mulf %228, %229 : vector<10x1xf32>
    %cst_115 = arith.constant 2.000000e+00 : f32
    %231 = vector.broadcast %cst_115 : f32 to vector<10x1xf32>
    %232 = arith.subf %231, %230 : vector<10x1xf32>
    %233 = arith.mulf %229, %232 : vector<10x1xf32>
    %234 = vector.broadcast %233 : vector<10x1xf32> to vector<10x10xf32>
    %235 = arith.mulf %226, %234 : vector<10x10xf32>
    %cst_116 = arith.constant dense<0.000000e+00> : vector<10x16xf32>
    %236 = tpu.matmul %235, %219, %cst_116 {dimension_numbers = #tpu.dot_dimension_numbers<[1], [0], [0], [1], [0, 0, 1, 1], [], []>} : vector<10x10xf32>, vector<10x16xf32>, vector<10x16xf32> -> vector<10x16xf32>
    %237 = vector.extract_strided_slice %214 {offsets = [0, 0], sizes = [16, 32], strides = [1, 1]} : vector<32x32xf32> to vector<16x32xf32>
    %cst_117 = arith.constant dense<0.000000e+00> : vector<10x32xf32>
    %238 = tpu.matmul %236, %237, %cst_117 {dimension_numbers = #tpu.dot_dimension_numbers<[1], [0], [0], [1], [0, 0, 1, 1], [], []>} : vector<10x16xf32>, vector<16x32xf32>, vector<10x32xf32> -> vector<10x32xf32>
    %239 = vector.broadcast %216 : vector<1x32xf32> to vector<10x32xf32>
    %240 = arith.addf %239, %238 : vector<10x32xf32>
    %241 = vector.extract_strided_slice %212 {offsets = [0, 16], sizes = [10, 16], strides = [1, 1]} : vector<10x96xf32> to vector<10x16xf32>
    %242 = vector.extract_strided_slice %212 {offsets = [0, 48], sizes = [10, 16], strides = [1, 1]} : vector<10x96xf32> to vector<10x16xf32>
    %243 = vector.extract_strided_slice %212 {offsets = [0, 80], sizes = [10, 16], strides = [1, 1]} : vector<10x96xf32> to vector<10x16xf32>
    %cst_118 = arith.constant dense<0.000000e+00> : vector<10x10xf32>
    %244 = tpu.matmul %241, %242, %cst_118 {dimension_numbers = #tpu.dot_dimension_numbers<[1], [1], [0], [0], [0, 0, 1, 0], [], []>} : vector<10x16xf32>, vector<10x16xf32>, vector<10x10xf32> -> vector<10x10xf32>
    %245 = arith.addf %244, %5 : vector<10x10xf32>
    %cst_119 = arith.constant dense<0xFF800000> : vector<10xf32>
    %246 = vector.multi_reduction <maximumf>, %245, %cst_119 [1] : vector<10x10xf32> to vector<10xf32>
    %247 = vector.shape_cast %246 : vector<10xf32> to vector<10x1xf32>
    %248 = vector.broadcast %247 : vector<10x1xf32> to vector<10x10xf32>
    %249 = arith.subf %245, %248 : vector<10x10xf32>
    %250 = math.exp %249 : vector<10x10xf32>
    %cst_120 = arith.constant dense<0.000000e+00> : vector<10xf32>
    %251 = vector.multi_reduction <add>, %250, %cst_120 [1] : vector<10x10xf32> to vector<10xf32>
    %252 = vector.shape_cast %251 : vector<10xf32> to vector<10x1xf32>
    %253 = tpu.reciprocal %252 {approx = true} : vector<10x1xf32> -> vector<10x1xf32>
    %254 = arith.mulf %252, %253 : vector<10x1xf32>
    %cst_121 = arith.constant 2.000000e+00 : f32
    %255 = vector.broadcast %cst_121 : f32 to vector<10x1xf32>
    %256 = arith.subf %255, %254 : vector<10x1xf32>
    %257 = arith.mulf %253, %256 : vector<10x1xf32>
    %258 = vector.broadcast %257 : vector<10x1xf32> to vector<10x10xf32>
    %259 = arith.mulf %250, %258 : vector<10x10xf32>
    %cst_122 = arith.constant dense<0.000000e+00> : vector<10x16xf32>
    %260 = tpu.matmul %259, %243, %cst_122 {dimension_numbers = #tpu.dot_dimension_numbers<[1], [0], [0], [1], [0, 0, 1, 1], [], []>} : vector<10x10xf32>, vector<10x16xf32>, vector<10x16xf32> -> vector<10x16xf32>
    %261 = vector.extract_strided_slice %214 {offsets = [16, 0], sizes = [16, 32], strides = [1, 1]} : vector<32x32xf32> to vector<16x32xf32>
    %cst_123 = arith.constant dense<0.000000e+00> : vector<10x32xf32>
    %262 = tpu.matmul %260, %261, %cst_123 {dimension_numbers = #tpu.dot_dimension_numbers<[1], [0], [0], [1], [0, 0, 1, 1], [], []>} : vector<10x16xf32>, vector<16x32xf32>, vector<10x32xf32> -> vector<10x32xf32>
    %263 = arith.addf %240, %262 : vector<10x32xf32>
    %c1_124 = arith.constant 1 : index
    %c0_125 = arith.constant 0 : index
    %c0_126 = arith.constant 0 : index
    %264 = vector.load %arg10[%c1_124, %c0_125, %c0_126] : memref<2x1x32xf32, #tpu.memory_space<vmem>>, vector<1x1x32xf32>
    %265 = vector.shape_cast %264 : vector<1x1x32xf32> to vector<1x32xf32>
    %266 = vector.broadcast %265 : vector<1x32xf32> to vector<10x32xf32>
    %267 = arith.mulf %263, %266 : vector<10x32xf32>
    %268 = arith.addf %179, %267 : vector<10x32xf32>
    %c1_127 = arith.constant 1 : index
    %c0_128 = arith.constant 0 : index
    %c0_129 = arith.constant 0 : index
    %269 = vector.load %arg11[%c1_127, %c0_128, %c0_129] : memref<2x1x32xf32, #tpu.memory_space<vmem>>, vector<1x1x32xf32>
    %270 = vector.shape_cast %269 : vector<1x1x32xf32> to vector<1x32xf32>
    %c1_130 = arith.constant 1 : index
    %c0_131 = arith.constant 0 : index
    %c0_132 = arith.constant 0 : index
    %271 = vector.load %arg12[%c1_130, %c0_131, %c0_132] : memref<2x1x32xf32, #tpu.memory_space<vmem>>, vector<1x1x32xf32>
    %272 = vector.shape_cast %271 : vector<1x1x32xf32> to vector<1x32xf32>
    %cst_133 = arith.constant dense<0.000000e+00> : vector<10xf32>
    %273 = vector.multi_reduction <add>, %268, %cst_133 [1] : vector<10x32xf32> to vector<10xf32>
    %274 = vector.shape_cast %273 : vector<10xf32> to vector<10x1xf32>
    %cst_134 = arith.constant 3.200000e+01 : f32
    %275 = vector.broadcast %cst_134 : f32 to vector<10x1xf32>
    %276 = arith.divf %274, %275 : vector<10x1xf32>
    %277 = vector.broadcast %276 : vector<10x1xf32> to vector<10x32xf32>
    %278 = arith.subf %268, %277 : vector<10x32xf32>
    %279 = arith.mulf %278, %278 : vector<10x32xf32>
    %cst_135 = arith.constant dense<0.000000e+00> : vector<10xf32>
    %280 = vector.multi_reduction <add>, %279, %cst_135 [1] : vector<10x32xf32> to vector<10xf32>
    %281 = vector.shape_cast %280 : vector<10xf32> to vector<10x1xf32>
    %cst_136 = arith.constant 3.200000e+01 : f32
    %282 = vector.broadcast %cst_136 : f32 to vector<10x1xf32>
    %283 = arith.divf %281, %282 : vector<10x1xf32>
    %284 = vector.broadcast %276 : vector<10x1xf32> to vector<10x32xf32>
    %285 = arith.subf %268, %284 : vector<10x32xf32>
    %cst_137 = arith.constant 9.99999997E-7 : f32
    %286 = vector.broadcast %cst_137 : f32 to vector<10x1xf32>
    %287 = arith.addf %283, %286 : vector<10x1xf32>
    %288 = math.rsqrt %287 : vector<10x1xf32>
    %289 = vector.broadcast %288 : vector<10x1xf32> to vector<10x32xf32>
    %290 = arith.mulf %285, %289 : vector<10x32xf32>
    %291 = vector.broadcast %270 : vector<1x32xf32> to vector<10x32xf32>
    %292 = arith.mulf %290, %291 : vector<10x32xf32>
    %293 = vector.broadcast %272 : vector<1x32xf32> to vector<10x32xf32>
    %294 = arith.addf %292, %293 : vector<10x32xf32>
    %c1_138 = arith.constant 1 : index
    %c0_139 = arith.constant 0 : index
    %c0_140 = arith.constant 0 : index
    %295 = vector.load %arg13[%c1_138, %c0_139, %c0_140] : memref<2x32x128xf32, #tpu.memory_space<vmem>>, vector<1x32x128xf32>
    %296 = vector.shape_cast %295 : vector<1x32x128xf32> to vector<32x128xf32>
    %cst_141 = arith.constant dense<0.000000e+00> : vector<10x128xf32>
    %297 = tpu.matmul %294, %296, %cst_141 {dimension_numbers = #tpu.dot_dimension_numbers<[1], [0], [0], [1], [0, 0, 1, 1], [], []>} : vector<10x32xf32>, vector<32x128xf32>, vector<10x128xf32> -> vector<10x128xf32>
    %c1_142 = arith.constant 1 : index
    %c0_143 = arith.constant 0 : index
    %c0_144 = arith.constant 0 : index
    %298 = vector.load %arg14[%c1_142, %c0_143, %c0_144] : memref<2x1x128xf32, #tpu.memory_space<vmem>>, vector<1x1x128xf32>
    %299 = vector.shape_cast %298 : vector<1x1x128xf32> to vector<1x128xf32>
    %300 = vector.broadcast %299 : vector<1x128xf32> to vector<10x128xf32>
    %301 = arith.addf %297, %300 : vector<10x128xf32>
    %cst_145 = arith.constant 5.000000e-01 : f32
    %302 = vector.broadcast %cst_145 : f32 to vector<10x128xf32>
    %303 = arith.mulf %302, %301 : vector<10x128xf32>
    %cst_146 = arith.constant 0.707106769 : f32
    %304 = vector.broadcast %cst_146 : f32 to vector<10x128xf32>
    %305 = arith.mulf %301, %304 : vector<10x128xf32>
    %306 = math.absf %305 : vector<10x128xf32>
    %cst_147 = arith.constant 0.327591091 : f32
    %307 = vector.broadcast %cst_147 : f32 to vector<10x128xf32>
    %308 = arith.mulf %307, %306 : vector<10x128xf32>
    %cst_148 = arith.constant 1.000000e+00 : f32
    %309 = vector.broadcast %cst_148 : f32 to vector<10x128xf32>
    %310 = arith.addf %309, %308 : vector<10x128xf32>
    %cst_149 = arith.constant 1.000000e+00 : f32
    %311 = vector.broadcast %cst_149 : f32 to vector<10x128xf32>
    %312 = arith.divf %311, %310 : vector<10x128xf32>
    %cst_150 = arith.constant 1.06140542 : f32
    %313 = vector.broadcast %cst_150 : f32 to vector<10x128xf32>
    %314 = arith.mulf %313, %312 : vector<10x128xf32>
    %cst_151 = arith.constant -1.45315206 : f32
    %315 = vector.broadcast %cst_151 : f32 to vector<10x128xf32>
    %316 = arith.addf %314, %315 : vector<10x128xf32>
    %317 = arith.mulf %316, %312 : vector<10x128xf32>
    %cst_152 = arith.constant 1.42141378 : f32
    %318 = vector.broadcast %cst_152 : f32 to vector<10x128xf32>
    %319 = arith.addf %317, %318 : vector<10x128xf32>
    %320 = arith.mulf %319, %312 : vector<10x128xf32>
    %cst_153 = arith.constant -0.284496725 : f32
    %321 = vector.broadcast %cst_153 : f32 to vector<10x128xf32>
    %322 = arith.addf %320, %321 : vector<10x128xf32>
    %323 = arith.mulf %322, %312 : vector<10x128xf32>
    %cst_154 = arith.constant 0.254829586 : f32
    %324 = vector.broadcast %cst_154 : f32 to vector<10x128xf32>
    %325 = arith.addf %323, %324 : vector<10x128xf32>
    %326 = arith.mulf %325, %312 : vector<10x128xf32>
    %cst_155 = arith.constant 0.000000e+00 : f32
    %327 = vector.broadcast %cst_155 : f32 to vector<10x128xf32>
    %328 = arith.subf %327, %306 : vector<10x128xf32>
    %329 = arith.mulf %328, %306 : vector<10x128xf32>
    %330 = math.exp %329 : vector<10x128xf32>
    %331 = arith.mulf %326, %330 : vector<10x128xf32>
    %cst_156 = arith.constant 1.000000e+00 : f32
    %332 = vector.broadcast %cst_156 : f32 to vector<10x128xf32>
    %333 = arith.subf %332, %331 : vector<10x128xf32>
    %cst_157 = arith.constant 0.000000e+00 : f32
    %334 = vector.broadcast %cst_157 : f32 to vector<10x128xf32>
    %335 = arith.cmpf oge, %305, %334 : vector<10x128xf32>
    %cst_158 = arith.constant 0.000000e+00 : f32
    %336 = vector.broadcast %cst_158 : f32 to vector<10x128xf32>
    %337 = arith.subf %336, %333 : vector<10x128xf32>
    %338 = arith.select %335, %333, %337 : vector<10x128xi1>, vector<10x128xf32>
    %cst_159 = arith.constant 1.000000e+00 : f32
    %339 = vector.broadcast %cst_159 : f32 to vector<10x128xf32>
    %340 = arith.addf %339, %338 : vector<10x128xf32>
    %341 = arith.mulf %303, %340 : vector<10x128xf32>
    %c1_160 = arith.constant 1 : index
    %c0_161 = arith.constant 0 : index
    %c0_162 = arith.constant 0 : index
    %342 = vector.load %arg15[%c1_160, %c0_161, %c0_162] : memref<2x128x32xf32, #tpu.memory_space<vmem>>, vector<1x128x32xf32>
    %343 = vector.shape_cast %342 : vector<1x128x32xf32> to vector<128x32xf32>
    %cst_163 = arith.constant dense<0.000000e+00> : vector<10x32xf32>
    %344 = tpu.matmul %341, %343, %cst_163 {dimension_numbers = #tpu.dot_dimension_numbers<[1], [0], [0], [1], [0, 0, 1, 1], [], []>} : vector<10x128xf32>, vector<128x32xf32>, vector<10x32xf32> -> vector<10x32xf32>
    %c1_164 = arith.constant 1 : index
    %c0_165 = arith.constant 0 : index
    %c0_166 = arith.constant 0 : index
    %345 = vector.load %arg16[%c1_164, %c0_165, %c0_166] : memref<2x1x32xf32, #tpu.memory_space<vmem>>, vector<1x1x32xf32>
    %346 = vector.shape_cast %345 : vector<1x1x32xf32> to vector<1x32xf32>
    %347 = vector.broadcast %346 : vector<1x32xf32> to vector<10x32xf32>
    %348 = arith.addf %344, %347 : vector<10x32xf32>
    %c1_167 = arith.constant 1 : index
    %c0_168 = arith.constant 0 : index
    %c0_169 = arith.constant 0 : index
    %349 = vector.load %arg17[%c1_167, %c0_168, %c0_169] : memref<2x1x32xf32, #tpu.memory_space<vmem>>, vector<1x1x32xf32>
    %350 = vector.shape_cast %349 : vector<1x1x32xf32> to vector<1x32xf32>
    %351 = vector.broadcast %350 : vector<1x32xf32> to vector<10x32xf32>
    %352 = arith.mulf %348, %351 : vector<10x32xf32>
    %353 = arith.addf %268, %352 : vector<10x32xf32>
    %c0_170 = arith.constant 0 : index
    %c0_171 = arith.constant 0 : index
    %354 = vector.load %arg18[%c0_170, %c0_171] : memref<1x32xf32, #tpu.memory_space<vmem>>, vector<1x32xf32>
    %c0_172 = arith.constant 0 : index
    %c0_173 = arith.constant 0 : index
    %355 = vector.load %arg19[%c0_172, %c0_173] : memref<1x32xf32, #tpu.memory_space<vmem>>, vector<1x32xf32>
    %cst_174 = arith.constant dense<0.000000e+00> : vector<10xf32>
    %356 = vector.multi_reduction <add>, %353, %cst_174 [1] : vector<10x32xf32> to vector<10xf32>
    %357 = vector.shape_cast %356 : vector<10xf32> to vector<10x1xf32>
    %cst_175 = arith.constant 3.200000e+01 : f32
    %358 = vector.broadcast %cst_175 : f32 to vector<10x1xf32>
    %359 = arith.divf %357, %358 : vector<10x1xf32>
    %360 = vector.broadcast %359 : vector<10x1xf32> to vector<10x32xf32>
    %361 = arith.subf %353, %360 : vector<10x32xf32>
    %362 = arith.mulf %361, %361 : vector<10x32xf32>
    %cst_176 = arith.constant dense<0.000000e+00> : vector<10xf32>
    %363 = vector.multi_reduction <add>, %362, %cst_176 [1] : vector<10x32xf32> to vector<10xf32>
    %364 = vector.shape_cast %363 : vector<10xf32> to vector<10x1xf32>
    %cst_177 = arith.constant 3.200000e+01 : f32
    %365 = vector.broadcast %cst_177 : f32 to vector<10x1xf32>
    %366 = arith.divf %364, %365 : vector<10x1xf32>
    %367 = vector.broadcast %359 : vector<10x1xf32> to vector<10x32xf32>
    %368 = arith.subf %353, %367 : vector<10x32xf32>
    %cst_178 = arith.constant 9.99999997E-7 : f32
    %369 = vector.broadcast %cst_178 : f32 to vector<10x1xf32>
    %370 = arith.addf %366, %369 : vector<10x1xf32>
    %371 = math.rsqrt %370 : vector<10x1xf32>
    %372 = vector.broadcast %371 : vector<10x1xf32> to vector<10x32xf32>
    %373 = arith.mulf %368, %372 : vector<10x32xf32>
    %374 = vector.broadcast %354 : vector<1x32xf32> to vector<10x32xf32>
    %375 = arith.mulf %373, %374 : vector<10x32xf32>
    %376 = vector.broadcast %355 : vector<1x32xf32> to vector<10x32xf32>
    %377 = arith.addf %375, %376 : vector<10x32xf32>
    %378 = vector.extract_strided_slice %377 {offsets = [0, 0], sizes = [1, 32], strides = [1, 1]} : vector<10x32xf32> to vector<1x32xf32>
    %c0_179 = arith.constant 0 : index
    %c0_180 = arith.constant 0 : index
    %379 = vector.load %arg20[%c0_179, %c0_180] : memref<2x32xf32, #tpu.memory_space<vmem>>, vector<1x32xf32>
    tpu.vector_store %arg20[%c0_179, %c0_180], %378 {strides = array<i32>} : memref<2x32xf32, #tpu.memory_space<vmem>>, vector<1x32xf32>,
    %380 = vector.extract_strided_slice %377 {offsets = [5, 0], sizes = [1, 32], strides = [1, 1]} : vector<10x32xf32> to vector<1x32xf32>
    %c1_181 = arith.constant 1 : index
    %c0_182 = arith.constant 0 : index
    %381 = vector.load %arg20[%c1_181, %c0_182] : memref<2x32xf32, #tpu.memory_space<vmem>>, vector<1x32xf32>
    tpu.vector_store %arg20[%c1_181, %c0_182], %380 {strides = array<i32>} : memref<2x32xf32, #tpu.memory_space<vmem>>, vector<1x32xf32>,
    return
  }
}

</mosaic_0001>

<bundles_post_ra>
// kernel: dinov2_vit_forward.1
= control target key start
LH: loop header
LB: loop body
LE: loop exit
PB: predicated region body
PF: predicated region fallthrough
CT: control target
= control target key end

     0   :  { %s2300_s0 = inlined_call_operand.vmem [shape: f32[10,192], index: 0, kind: input, shape index: {}]   ;;  %s2301_s1 = inlined_call_operand.vmem [shape: f32[10,32], index: 1, kind: input, shape index: {}]   ;;  %s2302_s2 = inlined_call_operand.vmem [shape: f32[10,10], index: 2, kind: input, shape index: {}]   ;;  %s2303_s3 = inlined_call_operand.vmem [shape: f32[192,32], index: 3, kind: input, shape index: {}]   ;;  %s2304_s4 = inlined_call_operand.vmem [shape: f32[2,1,32], index: 4, kind: input, shape index: {}]   ;;  %s2305_s5 = inlined_call_operand.vmem [shape: f32[2,1,32], index: 5, kind: input, shape index: {}]   ;;  %s2306_s6 = inlined_call_operand.vmem [shape: f32[2,32,96], index: 6, kind: input, shape index: {}]   ;;  %s2307_s7 = inlined_call_operand.vmem [shape: f32[2,1,96], index: 7, kind: input, shape index: {}]   ;;  %s2308_s8 = inlined_call_operand.vmem [shape: f32[2,32,32], index: 8, kind: input, shape index: {}]   ;;  %s2309_s9 = inlined_call_operand.vmem [shape: f32[2,1,32], index: 9, kind: input, shape index: {}]   ;;  %s2310_s10 = inlined_call_operand.vmem [shape: f32[2,1,32], index: 10, kind: input, shape index: {}]   ;;  %s2311_s11 = inlined_call_operand.vmem [shape: f32[2,1,32], index: 11, kind: input, shape index: {}]   ;;  %s2312_s12 = inlined_call_operand.vmem [shape: f32[2,1,32], index: 12, kind: input, shape index: {}]   ;;  %s2313_s13 = inlined_call_operand.vmem [shape: f32[2,32,128], index: 13, kind: input, shape index: {}]   ;;  %s2314_s14 = inlined_call_operand.vmem [shape: f32[2,1,128], index: 14, kind: input, shape index: {}]   ;;  %s2315_s15 = inlined_call_operand.vmem [shape: f32[2,128,32], index: 15, kind: input, shape index: {}]   ;;  %s2316_s16 = inlined_call_operand.vmem [shape: f32[2,1,32], index: 16, kind: input, shape index: {}]   ;;  %s2317_s17 = inlined_call_operand.vmem [shape: f32[2,1,32], index: 17, kind: input, shape index: {}]   ;;  %s2318_s18 = inlined_call_operand.vmem [shape: f32[1,32], index: 18, kind: input, shape index: {}]   ;;  %s2319_s19 = inlined_call_operand.vmem [shape: f32[1,32], index: 19, kind: input, shape index: {}]   ;;  %s2320_s20 = inlined_call_operand.hbm [shape: f32[2,32], index: 20, kind: output, shape index: {}]  }
   0x1   :  { %2328 = sst [smem:[#allocation5_spill]] %s2300_s0 }
   0x2   :  { %2329 = sst [smem:[#allocation6_spill]] %s2301_s1 }
   0x3   :  { %2330 = sst [smem:[#allocation7_spill]] %s2302_s2 }
   0x4   :  { %2331 = sst [smem:[#allocation8_spill]] %s2303_s3 }
   0x5   :  { %2332 = sst [smem:[#allocation9_spill]] %s2304_s4 }
   0x6   :  { %s2333_s23 = sld [smem:[#allocation8_spill]]  ;;  %vm96_vm0 = vcmask 523264  }
   0x7   :  { %s2334_s29 = sld [smem:[#allocation5_spill]] }
   0xc   :  { %v85_v0 = vld [vmem:[%s2333_s23 + $0x78] sm:$0xff]  ;;  %v84_v1 = vld [vmem:[%s2333_s23 + $0x70] sm:$0xff]  ;;  %v83_v2 = vld [vmem:[%s2333_s23 + $0x68] sm:$0xff] }
   0xd   :  { %103 = vmatpush.msra.mxu0 %v85_v0  ;;  %v93_v3 = vld [vmem:[%s2333_s23 + $0xb8] sm:$0xff]  ;;  %v82_v4 = vld [vmem:[%s2333_s23 + $0x60] sm:$0xff]  ;;  %v92_v5 = vld [vmem:[%s2333_s23 + $0xb0] sm:$0xff] }
   0xe   :  { %134 = vmatpush.msra.mxu1 %v93_v3  ;;  %v91_v6 = vld [vmem:[%s2333_s23 + $0xa8] sm:$0xff]  ;;  %v81_v7 = vld [vmem:[%s2333_s23 + $0x58] sm:$0xff]  ;;  %v90_v8 = vld [vmem:[%s2333_s23 + $0xa0] sm:$0xff] }
   0xf   :  { %104 = vmatpush.msra.mxu0 %v84_v1  ;;  %v80_v9 = vld [vmem:[%s2333_s23 + $0x50] sm:$0xff]  ;;  %v79_v10 = vld [vmem:[%s2333_s23 + $0x48] sm:$0xff]  ;;  %v89_v11 = vld [vmem:[%s2333_s23 + $0x98] sm:$0xff] }
  0x10   :  { %135 = vmatpush.msra.mxu1 %v92_v5  ;;  %v88_v12 = vld [vmem:[%s2333_s23 + $0x90] sm:$0xff]  ;;  %v78_v13 = vld [vmem:[%s2333_s23 + $0x40] sm:$0xff]  ;;  %v87_v14 = vld [vmem:[%s2333_s23 + $0x88] sm:$0xff] }
  0x11   :  { %105 = vmatpush.msra.mxu0 %v83_v2  ;;  %v77_v15 = vld [vmem:[%s2333_s23 + $0x38] sm:$0xff]  ;;  %v86_v16 = vld [vmem:[%s2333_s23 + $0x80] sm:$0xff]  ;;  %v76_v17 = vld [vmem:[%s2333_s23 + $0x30] sm:$0xff] }
  0x12   :  { %136 = vmatpush.msra.mxu1 %v91_v6  ;;  %v67_v18 = vld [vmem:[%s2334_s29 + $0x8] sm:$0xff] }
  0x13   :  { %106 = vmatpush.msra.mxu0 %v82_v4 }
  0x14   :  { %137 = vmatpush.msra.mxu1 %v90_v8 }
  0x15   :  { %107 = vmatpush.msra.mxu0 %v81_v7 }
  0x16   :  { %138 = vmatpush.msra.mxu1 %v89_v11 }
  0x17   :  { %108 = vmatpush.msra.mxu0 %v80_v9 }
  0x18   :  { %139 = vmatpush.msra.mxu1 %v88_v12 }
  0x19   :  { %109 = vmatpush.msra.mxu0 %v79_v10 }
  0x1a   :  { %140 = vmatpush.msra.mxu1 %v87_v14 }
  0x1b   :  { %110 = vmatpush.msra.mxu0 %v78_v13 }
  0x1c   :  { %25 = vsyncpa [#allocation3], 0  ;;  %v75_v19 = vld [vmem:[%s2333_s23 + $0x28] sm:$0xff]  ;;  %141 = vmatpush.msra.mxu1 %v86_v16  ;;  %v74_v20 = vld [vmem:[%s2333_s23 + $0x20] sm:$0xff]  ;;  %s2335_s25 = sld [smem:[#allocation6_spill]]  ;;  %vm153_vm1 = vcmask 261120  }
  0x1d   :  { %111 = vmatpush.msra.mxu0 %v77_v15  ;;  %1425 = vmatmul.msk.f32.vlgmr.msra.gmra.mxu1 %vm96_vm0, %v67_v18  ;;  %v73_v21 = vld [vmem:[%s2333_s23 + $0x18] sm:$0xff]  ;;  %v72_v22 = vld [vmem:[%s2333_s23 + $0x10] sm:$0xff]  ;;  %v71_v24 = vld [vmem:[%s2333_s23 + $0x8] sm:$0xff]  ;;  %vm157_vm2 = vcmask 254976   ;;  %v1634_v40 = vmov 32.0   ;;  %s2336_s24 = sld [smem:[#allocation9_spill]] }
  0x1e   :  { %v69_v23 = vld [vmem:[%s2334_s29 + $0x18] sm:$0x3]  ;;  %v70_v25 = vld [vmem:[%s2333_s23] sm:$0xff]  ;;  %v68_v27 = vld [vmem:[%s2334_s29 + $0x10] sm:$0x3]  ;;  %1540 = vrcp.f32 %v1634_v40  ;;  %s1636_s26 = smov 96  }
  0x1f   :  { %112 = vmatpush.msra.mxu0 %v76_v17  ;;  %v66_v26 = vld [vmem:[%s2334_s29] sm:$0xff]  ;;  %v219_v57 = vld [vmem:[%s2306_s6 + $0x18] sm:$0xff]  ;;  %v218_v58 = vld [vmem:[%s2306_s6 + $0x10] sm:$0xff]  ;;  %s1635_s29 = smov 80   ;;  %s1637_s27 = smov 112   ;;  %vm264_vm10 = vcmask 130048  }
  0x20   :  { %242 = vmatpush.msra.mxu2 %v219_v57  ;;  %v217_v59 = vld [vmem:[%s2306_s6 + $0x8] sm:$0xff]  ;;  %v216_v60 = vld [vmem:[%s2306_s6] sm:$0xff]  ;;  %s2337_s30 = sld [smem:[#allocation7_spill]]  ;;  %vm300_vm11 = vcmask 74752   ;;  %vm296_vm12 = vcmask 80896   ;;  %s1638_s1 = smov 64  }
  0x21   :  { %113 = vmatpush.msra.mxu0 %v75_v19  ;;  %v1519_v15 = vld [vmem:[%s2305_s5] ss:$0 sm:$0xff]  ;;  %s2326_s22 = smov 48   ;;  %vm337_vm13 = vcmask 1041408   ;;  %s1416_s28 = sshll.u32 %s2320_s20, 4  ;;  %s1417_s28 = int_to_ptr.hbm [resolvable:$true] %s1416_s28 }
  0x22   :  { %v94_v28 = vld [vmem:[%s2335_s25] sm:$0xff]  ;;  %v95_v34 = vld [vmem:[%s2335_s25 + $0x8] sm:$0x3]  ;;  %243 = vmatpush.msra.mxu2 %v218_v58 }
  0x23   :  { %114 = vmatpush.msra.mxu0 %v74_v20  ;;  %v1518_v11 = vld [vmem:[%s2336_s24] ss:$0 sm:$0xff] }
  0x24   :  { %v1541_v41 = vpop.eup %1540  ;;  %244 = vmatpush.msra.mxu2 %v217_v59 }
  0x25   :  { %115 = vmatpush.msra.mxu0 %v73_v21  ;;  %1426 = vmatmul.msk.f32.gmra.mxu1 %vm96_vm0, %v69_v23  ;;  %v162_v42 = vmul.f32 32.0, %v1541_v41  ;;  %vm166_vm3 = vweird.f32 %v1541_v41 }
  0x26   :  { %245 = vmatpush.msra.mxu2 %v216_v60 }
  0x27   :  { %116 = vmatpush.msra.mxu0 %v72_v22  ;;  %v163_v43 = vsub.f32 1.0, %v162_v42 }
  0x29   :  { %117 = vmatpush.msra.mxu0 %v71_v24  ;;  %v164_v44 = vmul.f32 %v1541_v41, %v163_v43 }
  0x2b   :  { %118 = vmatpush.msra.mxu0 %v70_v25  ;;  %v165_v45 = vadd.f32 %v1541_v41, %v164_v44  ;;  %v1520_v25 = vld [vmem:[%s2307_s7] ss:$0 sm:$0xff] }
  0x2c   :  { %119 = vmatmul.f32.vlgmr.msra.gmra.mxu0 %v66_v26 }
  0x2d   :  { %v1846_v46 = vsel %vm166_vm3, %v1541_v41, %v165_v45 }
  0x34   :  { %122 = vmatmul.f32.gmra.mxu0 %v68_v27 }
  0x9a   :  { %v143_v29 = vpop.f32.mrf.mxu1 }
  0xa2   :  { %v146_v36 = vpop.f32.mrf.mxu1 }
  0xa9   :  { %v120_v30 = vpop.f32.mrf.mxu0 }
  0xaa   :  { %v121_v31 = vadd.f32 %v120_v30, %v94_v28 }
  0xac   :  { %v1835_v32 = vadd.f32 %v143_v29, %v121_v31 }
  0xae   :  { %v154_v33 = vsel %vm153_vm1, %v1835_v32, 0.0 }
  0xaf   :  { %155 = vadd.xlane.f32.xlu0 %v154_v33 }
  0xb1   :  { %v123_v35 = vpop.f32.mrf.mxu0 }
  0xb2   :  { %v124_v37 = vadd.f32 %v123_v35, %v95_v34 }
  0xb4   :  { %v1842_v38 = vadd.f32 %v146_v36, %v124_v37  ;;  %v1910_v37 = vld [vmem:[%s2337_s30] sm:$0xff] }
  0xb6   :  { %v158_v39 = vsel %vm157_vm2, %v1842_v38, 0.0 }
  0xb7   :  { %159 = vadd.xlane.f32.xlu0 %v158_v39  ;;  %v1915_v39 = vld [vmem:[%s2337_s30 + $0x8] sm:$0x3] }
 0x122   :  { %v156_v47 = vpop.xlane.xlu0 %155 }
 0x123   :  { %v168_v48 = vmul.f32 %v1846_v46, %v156_v47 }
 0x125   :  { %v170_v49 = vsub.f32 %v1835_v32, %v168_v48 }
 0x127   :  { %v172_v50 = vmul.f32 %v170_v49, %v170_v49 }
 0x129   :  { %v174_v51 = vsel %vm153_vm1, %v172_v50, 0.0 }
 0x12a   :  { %175 = vadd.xlane.f32.xlu1 %v174_v51  ;;  %v160_v52 = vpop.xlane.xlu0 %159 }
 0x12b   :  { %v169_v53 = vmul.f32 %v1846_v46, %v160_v52 }
 0x12d   :  { %v171_v54 = vsub.f32 %v1842_v38, %v169_v53 }
 0x12f   :  { %v173_v55 = vmul.f32 %v171_v54, %v171_v54 }
 0x131   :  { %v177_v56 = vsel %vm157_vm2, %v173_v55, 0.0 }
 0x132   :  { %178 = vadd.xlane.f32.xlu1 %v177_v56 }
 0x19d   :  { %v176_v61 = vpop.xlane.xlu1 %175 }
 0x19e   :  { %v180_v62 = vmul.f32 %v176_v61, %v1846_v46 }
 0x1a0   :  { %v182_v63 = vadd.f32 1e-06, %v180_v62 }
 0x1a2   :  { %1542 = vrsqrt.f32 %v182_v63  ;;  %vm190_vm5 = vweird.f32 %v182_v63 }
 0x1a5   :  { %v179_v0 = vpop.xlane.xlu1 %178 }
 0x1a6   :  { %v181_v1 = vmul.f32 %v179_v0, %v1846_v46 }
 0x1a8   :  { %v1543_v2 = vpop.eup %1542  ;;  %v183_v3 = vadd.f32 1e-06, %v181_v1 }
 0x1a9   :  { %v185_v4 = vmul.f32 %v1543_v2, %v182_v63  ;;  %vm191_vm4 = vweird.f32 %v1543_v2 }
 0x1aa   :  { %1544 = vrsqrt.f32 %v183_v3  ;;  %vm192_vm6 = vmor %vm190_vm5, %vm191_vm4  ;;  %vm200_vm8 = vweird.f32 %v183_v3 }
 0x1ab   :  { %v186_v5 = vmul.f32 %v1543_v2, %v185_v4 }
 0x1ad   :  { %v187_v6 = vmul.f32 0.5, %v186_v5 }
 0x1af   :  { %v188_v7 = vsub.f32 1.5, %v187_v6 }
 0x1b0   :  { %v1545_v8 = vpop.eup %1544 }
 0x1b1   :  { %v189_v9 = vmul.f32 %v1543_v2, %v188_v7  ;;  %v195_v10 = vmul.f32 %v1545_v8, %v183_v3  ;;  %vm201_vm7 = vweird.f32 %v1545_v8 }
 0x1b2   :  { %vm202_vm9 = vmor %vm200_vm8, %vm201_vm7 }
 0x1b3   :  { %v193_v12 = vsel %vm192_vm6, %v1543_v2, %v189_v9  ;;  %v196_v13 = vmul.f32 %v1545_v8, %v195_v10 }
 0x1b4   :  { %v204_v14 = vmul.f32 %v193_v12, %v170_v49 }
 0x1b5   :  { %v197_v16 = vmul.f32 0.5, %v196_v13 }
 0x1b6   :  { %v209_v17 = vmul.f32 %v1518_v11, %v204_v14 }
 0x1b7   :  { %v198_v18 = vsub.f32 1.5, %v197_v16 }
 0x1b8   :  { %v214_v19 = vadd.f32 %v1519_v15, %v209_v17 }
 0x1b9   :  { %v199_v20 = vmul.f32 %v1545_v8, %v198_v18 }
 0x1ba   :  { %1427 = vmatmul.msk.f32.vlgmr.msra.gmra.mxu2 %vm153_vm1, %v214_v19 }
 0x1bb   :  { %v203_v21 = vsel %vm202_vm9, %v1545_v8, %v199_v20 }
 0x1bc   :  { %v205_v22 = vmul.f32 %v203_v21, %v171_v54  ;;  %v254_v21 = vld [vmem:[%s2308_s8 + $0x8] sm:$0xff] }
 0x1bd   :  { %383 = vmatpush.msra.mxu3 %v254_v21 }
 0x1be   :  { %v210_v23 = vmul.f32 %v1518_v11, %v205_v22 }
 0x1c0   :  { %v215_v24 = vadd.f32 %v1519_v15, %v210_v23 }
 0x1c2   :  { %1428 = vmatmul.msk.f32.gmra.mxu2 %vm153_vm1, %v215_v24 }
 0x23d   :  { %v247_v26 = vpop.f32.mrf.mxu2 }
 0x23e   :  { %v1879_v27 = vadd.f32 %v1520_v25, %v247_v26 }
 0x240   :  { %401 = vrot.lane.b32.xlu1 %v1879_v27, %s1635_s29 }
 0x245   :  { %v250_v28 = vpop.f32.mrf.mxu2 }
 0x246   :  { %v1883_v29 = vadd.f32 %v1520_v25, %v250_v28 }
 0x248   :  { %403 = vrot.lane.b32.xlu0 %v1883_v29, %s1635_s29  ;;  %262 = vrot.lane.b32.xlu2 %v1883_v29, %s1636_s26 }
 0x250   :  { %260 = vrot.lane.b32.xlu2 %v1879_v27, %s1636_s26 }
 0x258   :  { %397 = vrot.lane.b32.xlu2 %v1879_v27, %s1637_s27 }
 0x260   :  { %399 = vrot.lane.b32.xlu2 %v1883_v29, %s1637_s27 }
 0x2a2   :  { %v263_v30 = vpop.permute.xlu2 %262 }
 0x2a3   :  { %1429 = vmatpush.xpose.msk.msrb.mxu0 %vm264_vm10, %v263_v30  ;;  %1509 = vmatpush.xpose.msk.msrb.mxu1 %vm264_vm10, %v263_v30 }
 0x2aa   :  { %v261_v31 = vpop.permute.xlu2 %260 }
 0x2ab   :  { %1430 = vmatpush.xpose.msk.msrb.mxu0 %vm264_vm10, %v261_v31  ;;  %1510 = vmatpush.xpose.msk.msrb.mxu1 %vm264_vm10, %v261_v31 }
 0x2ae   :  { %1431 = vmatmul.msk.f32.vlgmr.msrb.gmra.mxu0 %vm264_vm10, %v1879_v27  ;;  %1432 = vmatmul.msk.f32.vlgmr.msrb.gmra.mxu1 %vm264_vm10, %v1883_v29 }
 0x2b2   :  { %v402_v34 = vpop.permute.xlu1 %401  ;;  %v398_v35 = vpop.permute.xlu2 %397 }
 0x2ba   :  { %v404_v33 = vpop.permute.xlu0 %403  ;;  %v400_v36 = vpop.permute.xlu2 %399 }
 0x2bb   :  { %1438 = vmatpush.xpose.msk.msra.mxu1 %vm264_vm10, %v404_v33 }
 0x2bf   :  { %1439 = vmatpush.xpose.msk.msra.mxu1 %vm264_vm10, %v402_v34 }
 0x2c2   :  { %1440 = vmatmul.msk.f32.vlgmr.msra.gmra.mxu1 %vm264_vm10, %v398_v35 }
 0x2ca   :  { %1441 = vmatmul.msk.f32.gmra.mxu1 %vm264_vm10, %v400_v36 }
 0x32b   :  { %v290_v40 = vpop.f32.mrf.mxu0  ;;  %v293_v41 = vpop.f32.mrf.mxu1 }
 0x32c   :  { %v291_v42 = vadd.f32 %v290_v40, %v1910_v37  ;;  %v294_v43 = vadd.f32 %v293_v41, %v1915_v39 }
 0x32e   :  { %v301_v44 = vsel %vm300_vm11, %v294_v43, -inf  ;;  %v297_v45 = vsel %vm296_vm12, %v291_v42, -inf }
 0x32f   :  { %302 = vmax.xlane.f32.xlu0 %v301_v44  ;;  %298 = vmax.xlane.f32.xlu2 %v297_v45  ;;  %v255_v44 = vld [vmem:[%s2308_s8 + $0x10] sm:$0xff] }
 0x33f   :  { %v430_v47 = vpop.f32.mrf.mxu1 }
 0x340   :  { %v431_v48 = vadd.f32 %v430_v47, %v1910_v37 }
 0x342   :  { %v436_v49 = vsel %vm296_vm12, %v431_v48, -inf }
 0x343   :  { %326 = vrot.lane.b32.xlu0 %v1879_v27, %s1638_s1  ;;  %437 = vmax.xlane.f32.xlu1 %v436_v49 }
 0x347   :  { %v433_v50 = vpop.f32.mrf.mxu1 }
 0x348   :  { %v434_v51 = vadd.f32 %v433_v50, %v1915_v39 }
 0x34a   :  { %v439_v52 = vsel %vm300_vm11, %v434_v51, -inf }
 0x34b   :  { %440 = vmax.xlane.f32.xlu2 %v439_v52  ;;  %v1521_v52 = vld [vmem:[%s2309_s9] ss:$0 sm:$0xff] }
 0x35c   :  { %328 = vrot.lane.b32.xlu1 %v1883_v29, %s1638_s1 }
 0x3a2   :  { %v303_v53 = vpop.xlane.xlu0 %302  ;;  %v299_v54 = vpop.xlane.xlu2 %298 }
 0x3a3   :  { %v305_v55 = vsub.f32 %v294_v43, %v303_v53  ;;  %v304_v56 = vsub.f32 %v291_v42, %v299_v54  ;;  %v253_v42 = vld [vmem:[%s2308_s8] sm:$0xff]  ;;  %v256_v43 = vld [vmem:[%s2308_s8 + $0x18] sm:$0xff] }
 0x3a4   :  { %384 = vmatpush.msra.mxu3 %v253_v42  ;;  %v1522_v54 = vld [vmem:[%s2310_s10] ss:$0 sm:$0xff] }
 0x3a5   :  { %v308_v57 = vmul.f32 1.442695, %v305_v55  ;;  %v306_v58 = vmul.f32 1.442695, %v304_v56 }
 0x3a6   :  { %520 = vmatpush.msrb.mxu3 %v256_v43 }
 0x3a7   :  { %1546 = vpow2.f32 %v308_v57 }
 0x3a8   :  { %1548 = vpow2.f32 %v306_v58  ;;  %521 = vmatpush.msrb.mxu3 %v255_v44 }
 0x3ad   :  { %v1547_v59 = vpop.eup %1546 }
 0x3ae   :  { %v1549_v60 = vpop.eup %1548  ;;  %v313_v61 = vsel %vm300_vm11, %v1547_v59, 0.0 }
 0x3af   :  { %v310_v62 = vsel %vm296_vm12, %v1549_v60, 0.0  ;;  %314 = vadd.xlane.f32.xlu2 %v313_v61 }
 0x3b0   :  { %311 = vadd.xlane.f32.xlu0 %v310_v62 }
 0x3b5   :  { %v327_v10 = vpop.permute.xlu0 %326 }
 0x3b6   :  { %v438_v63 = vpop.xlane.xlu1 %437 }
 0x3b7   :  { %v442_v0 = vsub.f32 %v431_v48, %v438_v63 }
 0x3b9   :  { %v444_v1 = vmul.f32 1.442695, %v442_v0 }
 0x3bb   :  { %1550 = vpow2.f32 %v444_v1 }
 0x3be   :  { %v441_v2 = vpop.xlane.xlu2 %440 }
 0x3bf   :  { %v443_v3 = vsub.f32 %v434_v51, %v441_v2 }
 0x3c1   :  { %v1551_v4 = vpop.eup %1550  ;;  %v446_v5 = vmul.f32 1.442695, %v443_v3 }
 0x3c2   :  { %v448_v6 = vsel %vm296_vm12, %v1551_v4, 0.0 }
 0x3c3   :  { %1552 = vpow2.f32 %v446_v5  ;;  %449 = vadd.xlane.f32.xlu2 %v448_v6 }
 0x3c4   :  { %464 = vrot.lane.b32.xlu0 %v1879_v27, %s2326_s22 }
 0x3c9   :  { %v1553_v7 = vpop.eup %1552 }
 0x3ca   :  { %v451_v8 = vsel %vm300_vm11, %v1553_v7, 0.0 }
 0x3cb   :  { %452 = vadd.xlane.f32.xlu2 %v451_v8 }
 0x3ce   :  { %v329_v9 = vpop.permute.xlu1 %328 }
 0x3cf   :  { %1433 = vmatpush.msk.msrb.mxu2 %vm337_vm13, %v329_v9 }
 0x3d1   :  { %355 = vmatpush.msrb.mxu2 %v327_v10  ;;  %v598_v10 = vld [vmem:[%s2313_s13 + $0x18] sm:$0xff] }
 0x3d2   :  { %621 = vmatpush.msra.mxu0 %v598_v10  ;;  %v715_v10 = vld [vmem:[%s2315_s15 + $0x18] sm:$0xff] }
 0x3e3   :  { %466 = vrot.lane.b32.xlu2 %v1883_v29, %s2326_s22 }
 0x422   :  { %v315_v11 = vpop.xlane.xlu2 %314 }
 0x423   :  { %v312_v12 = vpop.xlane.xlu0 %311  ;;  %1554 = vrcp.f32 %v315_v11 }
 0x424   :  { %1556 = vrcp.f32 %v312_v12 }
 0x429   :  { %v1555_v13 = vpop.eup %1554 }
 0x42a   :  { %v1557_v14 = vpop.eup %1556  ;;  %v319_v17 = vmul.f32 %v1555_v13, %v315_v11  ;;  %v597_v11 = vld [vmem:[%s2313_s13 + $0x10] sm:$0xff] }
 0x42b   :  { %v318_v15 = vmul.f32 %v1557_v14, %v312_v12  ;;  %622 = vmatpush.msra.mxu0 %v597_v11  ;;  %v596_v12 = vld [vmem:[%s2313_s13 + $0x8] sm:$0xff] }
 0x42c   :  { %v321_v20 = vsub.f32 2.0, %v319_v17 }
 0x42d   :  { %v320_v16 = vsub.f32 2.0, %v318_v15  ;;  %623 = vmatpush.msra.mxu0 %v596_v12  ;;  %v714_v12 = vld [vmem:[%s2315_s15 + $0x10] sm:$0xff] }
 0x42e   :  { %v323_v22 = vmul.f32 %v1555_v13, %v321_v20  ;;  %v595_v13 = vld [vmem:[%s2313_s13] sm:$0xff] }
 0x42f   :  { %v322_v18 = vmul.f32 %v1557_v14, %v320_v16  ;;  %624 = vmatpush.msra.mxu0 %v595_v13 }
 0x430   :  { %v325_v24 = vmul.f32 %v1547_v59, %v323_v22 }
 0x431   :  { %v324_v19 = vmul.f32 %v1549_v60, %v322_v18 }
 0x433   :  { %1434 = vmatmul.msk.f32.vlgmr.msrb.gmra.mxu2 %vm296_vm12, %v324_v19 }
 0x436   :  { %v450_v23 = vpop.xlane.xlu2 %449  ;;  %v465_v34 = vpop.permute.xlu0 %464 }
 0x437   :  { %1558 = vrcp.f32 %v450_v23 }
 0x43b   :  { %1435 = vmatmul.msk.f32.gmra.mxu2 %vm296_vm12, %v325_v24 }
 0x43d   :  { %v1559_v25 = vpop.eup %1558 }
 0x43e   :  { %v456_v26 = vmul.f32 %v1559_v25, %v450_v23  ;;  %v453_v27 = vpop.xlane.xlu2 %452 }
 0x43f   :  { %1560 = vrcp.f32 %v453_v27 }
 0x440   :  { %v458_v28 = vsub.f32 2.0, %v456_v26 }
 0x442   :  { %v460_v29 = vmul.f32 %v1559_v25, %v458_v28  ;;  %v1523_v28 = vld [vmem:[%s2311_s11] ss:$0 sm:$0xff] }
 0x444   :  { %v462_v35 = vmul.f32 %v1551_v4, %v460_v29 }
 0x445   :  { %v1561_v30 = vpop.eup %1560 }
 0x446   :  { %v457_v31 = vmul.f32 %v1561_v30, %v453_v27  ;;  %v467_v33 = vpop.permute.xlu2 %466 }
 0x447   :  { %1442 = vmatpush.msk.msra.mxu2 %vm337_vm13, %v467_v33  ;;  %v1524_v33 = vld [vmem:[%s2312_s12] ss:$0 sm:$0xff] }
 0x448   :  { %v459_v36 = vsub.f32 2.0, %v457_v31 }
 0x449   :  { %492 = vmatpush.msra.mxu2 %v465_v34 }
 0x44a   :  { %1443 = vmatmul.msk.f32.vlgmr.msra.gmra.mxu2 %vm296_vm12, %v462_v35  ;;  %v461_v40 = vmul.f32 %v1561_v30, %v459_v36 }
 0x44c   :  { %v463_v41 = vmul.f32 %v1553_v7, %v461_v40 }
 0x452   :  { %1444 = vmatmul.msk.f32.gmra.mxu2 %vm296_vm12, %v463_v41 }
 0x4b6   :  { %v357_v45 = vpop.f32.mrf.mxu2 }
 0x4b7   :  { %1436 = vmatmul.msk.f32.vlgmr.msra.gmra.mxu3 %vm264_vm10, %v357_v45 }
 0x4be   :  { %v360_v47 = vpop.f32.mrf.mxu2 }
 0x4bf   :  { %1437 = vmatmul.msk.f32.gmra.mxu3 %vm264_vm10, %v360_v47  ;;  %v727_v47 = vld [vmem:[%s2315_s15 + $0x78] sm:$0xff] }
 0x4c0   :  { %732 = vmatpush.msrb.mxu1 %v727_v47 }
 0x4cd   :  { %v494_v48 = vpop.f32.mrf.mxu2 }
 0x4ce   :  { %1445 = vmatmul.msk.f32.vlgmr.msrb.gmra.mxu3 %vm264_vm10, %v494_v48  ;;  %v726_v48 = vld [vmem:[%s2315_s15 + $0x70] sm:$0xff] }
 0x4cf   :  { %733 = vmatpush.msrb.mxu1 %v726_v48 }
 0x4d5   :  { %v497_v49 = vpop.f32.mrf.mxu2 }
 0x4d6   :  { %1446 = vmatmul.msk.f32.gmra.mxu3 %vm264_vm10, %v497_v49  ;;  %v1525_v49 = vld [vmem:[%s2314_s14] ss:$0 sm:$0xff] }
 0x53a   :  { %v386_v50 = vpop.f32.mrf.mxu3 }
 0x53b   :  { %v395_v53 = vadd.f32 %v1521_v52, %v386_v50  ;;  %v725_v50 = vld [vmem:[%s2315_s15 + $0x68] sm:$0xff] }
 0x53c   :  { %734 = vmatpush.msrb.mxu1 %v725_v50 }
 0x542   :  { %v389_v51 = vpop.f32.mrf.mxu3 }
 0x543   :  { %v396_v59 = vadd.f32 %v1521_v52, %v389_v51  ;;  %v724_v52 = vld [vmem:[%s2315_s15 + $0x60] sm:$0xff] }
 0x544   :  { %735 = vmatpush.msrb.mxu1 %v724_v52 }
 0x551   :  { %v523_v55 = vpop.f32.mrf.mxu3 }
 0x552   :  { %v529_v56 = vadd.f32 %v523_v55, %v395_v53 }
 0x554   :  { %v535_v57 = vmul.f32 %v1522_v54, %v529_v56  ;;  %v722_v56 = vld [vmem:[%s2315_s15 + $0x50] sm:$0xff] }
 0x556   :  { %v1966_v58 = vadd.f32 %v535_v57, %v1835_v32 }
 0x558   :  { %v541_v60 = vsel %vm153_vm1, %v1966_v58, 0.0 }
 0x559   :  { %542 = vadd.xlane.f32.xlu1 %v541_v60  ;;  %v526_v61 = vpop.f32.mrf.mxu3 }
 0x55a   :  { %v530_v62 = vadd.f32 %v526_v61, %v396_v59  ;;  %v721_v59 = vld [vmem:[%s2315_s15 + $0x48] sm:$0xff] }
 0x55c   :  { %v536_v63 = vmul.f32 %v1522_v54, %v530_v62  ;;  %v723_v54 = vld [vmem:[%s2315_s15 + $0x58] sm:$0xff]  ;;  %v720_v62 = vld [vmem:[%s2315_s15 + $0x40] sm:$0xff] }
 0x55d   :  { %736 = vmatpush.msrb.mxu1 %v723_v54 }
 0x55e   :  { %v1971_v0 = vadd.f32 %v536_v63, %v1842_v38 }
 0x55f   :  { %737 = vmatpush.msrb.mxu1 %v722_v56 }
 0x560   :  { %v544_v1 = vsel %vm157_vm2, %v1971_v0, 0.0 }
 0x561   :  { %545 = vadd.xlane.f32.xlu0 %v544_v1  ;;  %738 = vmatpush.msrb.mxu1 %v721_v59 }
 0x563   :  { %739 = vmatpush.msrb.mxu1 %v720_v62 }
 0x5cc   :  { %v543_v2 = vpop.xlane.xlu1 %542 }
 0x5cd   :  { %v547_v3 = vmul.f32 %v543_v2, %v1846_v46  ;;  %v719_v2 = vld [vmem:[%s2315_s15 + $0x38] sm:$0xff] }
 0x5ce   :  { %740 = vmatpush.msrb.mxu1 %v719_v2 }
 0x5cf   :  { %v549_v32 = vsub.f32 %v1966_v58, %v547_v3 }
 0x5d1   :  { %v551_v4 = vmul.f32 %v549_v32, %v549_v32 }
 0x5d3   :  { %v553_v5 = vsel %vm153_vm1, %v551_v4, 0.0 }
 0x5d4   :  { %554 = vadd.xlane.f32.xlu2 %v553_v5  ;;  %v546_v6 = vpop.xlane.xlu0 %545  ;;  %v717_v5 = vld [vmem:[%s2315_s15 + $0x28] sm:$0xff] }
 0x5d5   :  { %v548_v7 = vmul.f32 %v546_v6, %v1846_v46 }
 0x5d7   :  { %v550_v8 = vsub.f32 %v1971_v0, %v548_v7  ;;  %v716_v7 = vld [vmem:[%s2315_s15 + $0x20] sm:$0xff] }
 0x5d9   :  { %v552_v38 = vmul.f32 %v550_v8, %v550_v8 }
 0x5db   :  { %v556_v9 = vsel %vm157_vm2, %v552_v38, 0.0 }
 0x5dc   :  { %557 = vadd.xlane.f32.xlu1 %v556_v9 }
 0x647   :  { %v555_v14 = vpop.xlane.xlu2 %554 }
 0x648   :  { %v559_v15 = vmul.f32 %v555_v14, %v1846_v46 }
 0x64a   :  { %v561_v16 = vadd.f32 1e-06, %v559_v15 }
 0x64c   :  { %1562 = vrsqrt.f32 %v561_v16  ;;  %vm569_vm15 = vweird.f32 %v561_v16 }
 0x64f   :  { %v558_v17 = vpop.xlane.xlu1 %557 }
 0x650   :  { %v560_v18 = vmul.f32 %v558_v17, %v1846_v46  ;;  %v712_v17 = vld [vmem:[%s2315_s15] sm:$0xff] }
 0x652   :  { %v1563_v19 = vpop.eup %1562  ;;  %v562_v20 = vadd.f32 1e-06, %v560_v18 }
 0x653   :  { %v564_v21 = vmul.f32 %v1563_v19, %v561_v16  ;;  %vm570_vm14 = vweird.f32 %v1563_v19  ;;  %v713_v16 = vld [vmem:[%s2315_s15 + $0x8] sm:$0xff] }
 0x654   :  { %1564 = vrsqrt.f32 %v562_v20  ;;  %vm571_vm0 = vmor %vm569_vm15, %vm570_vm14  ;;  %vm579_vm4 = vweird.f32 %v562_v20 }
 0x655   :  { %v565_v22 = vmul.f32 %v1563_v19, %v564_v21 }
 0x657   :  { %v566_v23 = vmul.f32 0.5, %v565_v22 }
 0x659   :  { %v567_v24 = vsub.f32 1.5, %v566_v23 }
 0x65a   :  { %v1565_v25 = vpop.eup %1564 }
 0x65b   :  { %v568_v26 = vmul.f32 %v1563_v19, %v567_v24  ;;  %v574_v27 = vmul.f32 %v1565_v25, %v562_v20  ;;  %vm580_vm3 = vweird.f32 %v1565_v25 }
 0x65c   :  { %vm581_vm5 = vmor %vm579_vm4, %vm580_vm3 }
 0x65d   :  { %v572_v29 = vsel %vm571_vm0, %v1563_v19, %v568_v26  ;;  %v575_v30 = vmul.f32 %v1565_v25, %v574_v27 }
 0x65e   :  { %v583_v31 = vmul.f32 %v572_v29, %v549_v32  ;;  %v718_v32 = vld [vmem:[%s2315_s15 + $0x30] sm:$0xff] }
 0x65f   :  { %v576_v34 = vmul.f32 0.5, %v575_v30  ;;  %741 = vmatpush.msrb.mxu1 %v718_v32 }
 0x660   :  { %v588_v35 = vmul.f32 %v1523_v28, %v583_v31 }
 0x661   :  { %v577_v36 = vsub.f32 1.5, %v576_v34  ;;  %742 = vmatpush.msrb.mxu1 %v717_v5 }
 0x662   :  { %v593_v40 = vadd.f32 %v1524_v33, %v588_v35 }
 0x663   :  { %v578_v41 = vmul.f32 %v1565_v25, %v577_v36  ;;  %743 = vmatpush.msrb.mxu1 %v716_v7 }
 0x664   :  { %1447 = vmatmul.msk.f32.vlgmr.msra.gmra.mxu0 %vm153_vm1, %v593_v40 }
 0x665   :  { %v582_v42 = vsel %vm581_vm5, %v1565_v25, %v578_v41  ;;  %744 = vmatpush.msrb.mxu1 %v715_v10 }
 0x666   :  { %v584_v43 = vmul.f32 %v582_v42, %v550_v8 }
 0x667   :  { %745 = vmatpush.msrb.mxu1 %v714_v12 }
 0x668   :  { %v589_v44 = vmul.f32 %v1523_v28, %v584_v43 }
 0x669   :  { %746 = vmatpush.msrb.mxu1 %v713_v16 }
 0x66a   :  { %v594_v45 = vadd.f32 %v1524_v33, %v589_v44 }
 0x66b   :  { %747 = vmatpush.msrb.mxu1 %v712_v17 }
 0x66c   :  { %1448 = vmatmul.msk.f32.gmra.mxu0 %vm153_vm1, %v594_v45 }
 0x6e1   :  { %v626_v51 = vpop.f32.mrf.mxu0 }
 0x6e2   :  { %v2018_v53 = vadd.f32 %v1525_v49, %v626_v51 }
 0x6e4   :  { %v2024_v55 = vmul.f32 0.70710677, %v2018_v53  ;;  %v632_v7 = vmul.f32 0.5, %v2018_v53  ;;  %v1526_v53 = vld [vmem:[%s2316_s16] ss:$0 sm:$0xff] }
 0x6e6   :  { %v636_v57 = vand.u32 2147483647, %v2024_v55  ;;  %vm702_vm4 = vcmp.ge.f32.partialorder %v2024_v55, 0.0  ;;  %v1527_v55 = vld [vmem:[%s2317_s17] ss:$0 sm:$0xff] }
 0x6e8   :  { %v638_v60 = vmul.f32 0.3275911, %v636_v57  ;;  %v690_v23 = vsub.f32 0.0, %v636_v57 }
 0x6e9   :  { %v629_v61 = vpop.f32.mrf.mxu0 }
 0x6ea   :  { %v640_v63 = vadd.f32 1.0, %v638_v60  ;;  %v2036_v1 = vadd.f32 %v1525_v49, %v629_v61  ;;  %v692_v29 = vmul.f32 %v690_v23, %v636_v57 }
 0x6ec   :  { %1566 = vrcp.f32 %v640_v63  ;;  %v2042_v3 = vmul.f32 0.70710677, %v2036_v1  ;;  %v653_v13 = vand.u32 2147483648, %v640_v63  ;;  %v651_v15 = vand.u32 2147483647, %v640_v63 }
 0x6ed   :  { %vm647_vm7 = vweird.f32 %v640_v63  ;;  %v694_v40 = vmul.f32 1.442695, %v692_v29 }
 0x6ee   :  { %v637_v4 = vand.u32 2147483647, %v2042_v3  ;;  %v654_v19 = vor.u32 1.1754944e-38, %v653_v13  ;;  %vm652_vm9 = vcmp.eq.f32.partialorder %v651_v15, 8.507059e+37  ;;  %vm703_vm5 = vcmp.ge.f32.partialorder %v2042_v3, 0.0 }
 0x6f0   :  { %v639_v6 = vmul.f32 0.3275911, %v637_v4  ;;  %v691_v43 = vsub.f32 0.0, %v637_v4 }
 0x6f2   :  { %v1567_v8 = vpop.eup %1566  ;;  %v641_v9 = vadd.f32 1.0, %v639_v6  ;;  %v693_v50 = vmul.f32 %v691_v43, %v637_v4 }
 0x6f3   :  { %v643_v38 = vmul.f32 %v1567_v8, %v640_v63  ;;  %vm648_vm6 = vweird.f32 %v1567_v8 }
 0x6f4   :  { %1568 = vrcp.f32 %v641_v9  ;;  %vm649_vm8 = vmor %vm647_vm7, %vm648_vm6  ;;  %v668_v28 = vand.u32 2147483648, %v641_v9  ;;  %v666_v31 = vand.u32 2147483647, %v641_v9  ;;  %vm662_vm15 = vweird.f32 %v641_v9 }
 0x6f5   :  { %v644_v11 = vsub.f32 1.0, %v643_v38  ;;  %1570 = vpow2.f32 %v694_v40  ;;  %v696_v57 = vmul.f32 1.442695, %v693_v50  ;;  %v1451_v40 = vld [vmem:[%s2306_s6 + $0x20] sm:$0xff] }
 0x6f6   :  { %v669_v36 = vor.u32 1.1754944e-38, %v668_v28  ;;  %vm667_vm3 = vcmp.eq.f32.partialorder %v666_v31, 8.507059e+37 }
 0x6f7   :  { %v645_v14 = vmul.f32 %v1567_v8, %v644_v11  ;;  %1572 = vpow2.f32 %v696_v57  ;;  %v1528_v57 = vld [vmem:[%s2336_s24 + $0x1] ss:$0 sm:$0xff] }
 0x6f9   :  { %v646_v18 = vadd.f32 %v1567_v8, %v645_v14  ;;  %v633_v14 = vmul.f32 0.5, %v2036_v1 }
 0x6fa   :  { %v1569_v20 = vpop.eup %1568 }
 0x6fb   :  { %v650_v21 = vsel %vm649_vm8, %v1567_v8, %v646_v18  ;;  %v658_v24 = vmul.f32 %v1569_v20, %v641_v9  ;;  %vm663_vm14 = vweird.f32 %v1569_v20  ;;  %v1571_v59 = vpop.eup %1570 }
 0x6fc   :  { %v655_v22 = vsel %vm652_vm9, %v654_v19, %v650_v21  ;;  %vm664_vm0 = vmor %vm662_vm15, %vm663_vm14 }
 0x6fd   :  { %v672_v25 = vmul.f32 1.0614054, %v655_v22  ;;  %v659_v26 = vsub.f32 1.0, %v658_v24  ;;  %v1573_v38 = vpop.eup %1572 }
 0x6ff   :  { %v674_v27 = vadd.f32 -1.4531521, %v672_v25  ;;  %v660_v30 = vmul.f32 %v1569_v20, %v659_v26 }
 0x701   :  { %v676_v33 = vmul.f32 %v674_v27, %v655_v22  ;;  %v661_v34 = vadd.f32 %v1569_v20, %v660_v30 }
 0x703   :  { %v678_v35 = vadd.f32 1.4214138, %v676_v33  ;;  %v665_v41 = vsel %vm664_vm0, %v1569_v20, %v661_v34  ;;  %v1454_v34 = vld [vmem:[%s2306_s6 + $0x38] sm:$0xff] }
 0x704   :  { %v670_v44 = vsel %vm667_vm3, %v669_v36, %v665_v41  ;;  %849 = vmatpush.msrb.mxu2 %v1454_v34  ;;  %v1452_v36 = vld [vmem:[%s2306_s6 + $0x28] sm:$0xff] }
 0x705   :  { %v680_v42 = vmul.f32 %v678_v35, %v655_v22  ;;  %v673_v45 = vmul.f32 1.0614054, %v670_v44  ;;  %v1453_v35 = vld [vmem:[%s2306_s6 + $0x30] sm:$0xff] }
 0x706   :  { %850 = vmatpush.msrb.mxu2 %v1453_v35 }
 0x707   :  { %v682_v47 = vadd.f32 -0.28449672, %v680_v42  ;;  %v675_v48 = vadd.f32 -1.4531521, %v673_v45 }
 0x708   :  { %851 = vmatpush.msrb.mxu2 %v1452_v36 }
 0x709   :  { %v684_v49 = vmul.f32 %v682_v47, %v655_v22  ;;  %v677_v51 = vmul.f32 %v675_v48, %v670_v44 }
 0x70a   :  { %852 = vmatpush.msrb.mxu2 %v1451_v40 }
 0x70b   :  { %v686_v52 = vadd.f32 0.2548296, %v684_v49  ;;  %v679_v54 = vadd.f32 1.4214138, %v677_v51 }
 0x70d   :  { %v688_v56 = vmul.f32 %v686_v52, %v655_v22  ;;  %v681_v60 = vmul.f32 %v679_v54, %v670_v44 }
 0x70f   :  { %v698_v61 = vmul.f32 %v1571_v59, %v688_v56  ;;  %v683_v62 = vadd.f32 -0.28449672, %v681_v60 }
 0x711   :  { %v700_v63 = vsub.f32 1.0, %v698_v61  ;;  %v685_v2 = vmul.f32 %v683_v62, %v670_v44 }
 0x713   :  { %v704_v32 = vsub.f32 0.0, %v700_v63  ;;  %v687_v5 = vadd.f32 0.2548296, %v685_v2 }
 0x715   :  { %v706_v6 = vsel %vm702_vm4, %v700_v63, %v704_v32  ;;  %v689_v8 = vmul.f32 %v687_v5, %v670_v44  ;;  %v1529_v63 = vld [vmem:[%s2305_s5 + $0x1] ss:$0 sm:$0xff]  ;;  %s2338_s5 = smov 48  }
 0x716   :  { %v708_v4 = vadd.f32 1.0, %v706_v6 }
 0x717   :  { %v699_v10 = vmul.f32 %v1573_v38, %v689_v8 }
 0x718   :  { %v710_v9 = vmul.f32 %v708_v4, %v632_v7 }
 0x719   :  { %v701_v11 = vsub.f32 1.0, %v699_v10  ;;  %v1530_v10 = vld [vmem:[%s2307_s7 + $0x1] ss:$0 sm:$0xff] }
 0x71a   :  { %748 = vmatmul.f32.vlgmr.msrb.gmra.mxu1 %v710_v9 }
 0x71b   :  { %v705_v12 = vsub.f32 0.0, %v701_v11 }
 0x71d   :  { %v707_v13 = vsel %vm703_vm5, %v701_v11, %v705_v12 }
 0x71e   :  { %v709_v15 = vadd.f32 1.0, %v707_v13 }
 0x720   :  { %v711_v16 = vmul.f32 %v709_v15, %v633_v14 }
 0x722   :  { %751 = vmatmul.f32.gmra.mxu1 %v711_v16 }
 0x797   :  { %v749_v17 = vpop.f32.mrf.mxu1 }
 0x798   :  { %v750_v18 = vadd.f32 %v1526_v53, %v749_v17 }
 0x79a   :  { %v759_v19 = vmul.f32 %v1527_v55, %v750_v18 }
 0x79c   :  { %v2077_v20 = vadd.f32 %v759_v19, %v1966_v58 }
 0x79e   :  { %v767_v1 = vsel %vm153_vm1, %v2077_v20, 0.0 }
 0x79f   :  { %768 = vadd.xlane.f32.xlu0 %v767_v1  ;;  %v752_v3 = vpop.f32.mrf.mxu1 }
 0x7a0   :  { %v753_v21 = vadd.f32 %v1526_v53, %v752_v3 }
 0x7a2   :  { %v760_v22 = vmul.f32 %v1527_v55, %v753_v21 }
 0x7a4   :  { %v2082_v23 = vadd.f32 %v760_v22, %v1971_v0 }
 0x7a6   :  { %v770_v24 = vsel %vm157_vm2, %v2082_v23, 0.0 }
 0x7a7   :  { %771 = vadd.xlane.f32.xlu1 %v770_v24 }
 0x812   :  { %v769_v25 = vpop.xlane.xlu0 %768 }
 0x813   :  { %v773_v26 = vmul.f32 %v769_v25, %v1846_v46 }
 0x815   :  { %v775_v58 = vsub.f32 %v2077_v20, %v773_v26 }
 0x817   :  { %v777_v27 = vmul.f32 %v775_v58, %v775_v58 }
 0x819   :  { %v779_v28 = vsel %vm153_vm1, %v777_v27, 0.0 }
 0x81a   :  { %780 = vadd.xlane.f32.xlu0 %v779_v28  ;;  %v772_v29 = vpop.xlane.xlu1 %771 }
 0x81b   :  { %v774_v30 = vmul.f32 %v772_v29, %v1846_v46 }
 0x81d   :  { %v776_v31 = vsub.f32 %v2082_v23, %v774_v30 }
 0x81f   :  { %v778_v0 = vmul.f32 %v776_v31, %v776_v31 }
 0x821   :  { %v782_v33 = vsel %vm157_vm2, %v778_v0, 0.0 }
 0x822   :  { %783 = vadd.xlane.f32.xlu1 %v782_v33 }
 0x88d   :  { %v781_v41 = vpop.xlane.xlu0 %780 }
 0x88e   :  { %v785_v42 = vmul.f32 %v781_v41, %v1846_v46 }
 0x890   :  { %v787_v43 = vadd.f32 1e-06, %v785_v42 }
 0x892   :  { %1574 = vrsqrt.f32 %v787_v43  ;;  %vm795_vm7 = vweird.f32 %v787_v43 }
 0x895   :  { %v784_v44 = vpop.xlane.xlu1 %783 }
 0x896   :  { %v786_v45 = vmul.f32 %v784_v44, %v1846_v46 }
 0x898   :  { %v1575_v47 = vpop.eup %1574  ;;  %v788_v49 = vadd.f32 1e-06, %v786_v45 }
 0x899   :  { %v790_v48 = vmul.f32 %v1575_v47, %v787_v43  ;;  %vm796_vm6 = vweird.f32 %v1575_v47 }
 0x89a   :  { %1576 = vrsqrt.f32 %v788_v49  ;;  %vm797_vm8 = vmor %vm795_vm7, %vm796_vm6  ;;  %vm805_vm14 = vweird.f32 %v788_v49 }
 0x89b   :  { %v791_v50 = vmul.f32 %v1575_v47, %v790_v48 }
 0x89d   :  { %v792_v51 = vmul.f32 0.5, %v791_v50 }
 0x89f   :  { %v793_v52 = vsub.f32 1.5, %v792_v51 }
 0x8a0   :  { %v1577_v54 = vpop.eup %1576 }
 0x8a1   :  { %v794_v56 = vmul.f32 %v1575_v47, %v793_v52  ;;  %v800_v59 = vmul.f32 %v1577_v54, %v788_v49  ;;  %vm806_vm9 = vweird.f32 %v1577_v54 }
 0x8a2   :  { %vm807_vm15 = vmor %vm805_vm14, %vm806_vm9 }
 0x8a3   :  { %v798_v60 = vsel %vm797_vm8, %v1575_v47, %v794_v56  ;;  %v801_v62 = vmul.f32 %v1577_v54, %v800_v59 }
 0x8a4   :  { %v809_v61 = vmul.f32 %v798_v60, %v775_v58 }
 0x8a5   :  { %v802_v32 = vmul.f32 0.5, %v801_v62 }
 0x8a6   :  { %v814_v2 = vmul.f32 %v1528_v57, %v809_v61 }
 0x8a7   :  { %v803_v5 = vsub.f32 1.5, %v802_v32 }
 0x8a8   :  { %v819_v6 = vadd.f32 %v1529_v63, %v814_v2 }
 0x8a9   :  { %v804_v7 = vmul.f32 %v1577_v54, %v803_v5 }
 0x8aa   :  { %1456 = vmatmul.msk.f32.vlgmr.msrb.gmra.mxu2 %vm153_vm1, %v819_v6 }
 0x8ab   :  { %v808_v4 = vsel %vm807_vm15, %v1577_v54, %v804_v7 }
 0x8ac   :  { %v810_v8 = vmul.f32 %v808_v4, %v776_v31 }
 0x8ae   :  { %v815_v38 = vmul.f32 %v1528_v57, %v810_v8 }
 0x8b0   :  { %v820_v9 = vadd.f32 %v1529_v63, %v815_v38 }
 0x8b2   :  { %1457 = vmatmul.msk.f32.gmra.mxu2 %vm153_vm1, %v820_v9 }
 0x92d   :  { %v854_v11 = vpop.f32.mrf.mxu2 }
 0x92e   :  { %v855_v12 = vadd.f32 %v1530_v10, %v854_v11 }
 0x930   :  { %869 = vrot.lane.b32.xlu0 %v855_v12, %s1636_s26 }
 0x935   :  { %v857_v13 = vpop.f32.mrf.mxu2 }
 0x936   :  { %v2118_v14 = vadd.f32 %v1530_v10, %v857_v13 }
 0x938   :  { %1006 = vrot.lane.b32.xlu0 %v855_v12, %s1635_s29  ;;  %1008 = vrot.lane.b32.xlu1 %v2118_v14, %s1635_s29 }
 0x939   :  { %871 = vrot.lane.b32.xlu2 %v2118_v14, %s1636_s26 }
 0x940   :  { %1004 = vrot.lane.b32.xlu1 %v2118_v14, %s1637_s27 }
 0x941   :  { %1002 = vrot.lane.b32.xlu2 %v855_v12, %s1637_s27 }
 0x993   :  { %v872_v15 = vpop.permute.xlu2 %871 }
 0x994   :  { %1463 = vmatpush.xpose.msk.msra.mxu3 %vm264_vm10, %v872_v15 }
 0x99b   :  { %v1003_v17 = vpop.permute.xlu2 %1002 }
 0x9a2   :  { %v870_v16 = vpop.permute.xlu0 %869 }
 0x9a3   :  { %1464 = vmatpush.xpose.msk.msra.mxu3 %vm264_vm10, %v870_v16 }
 0x9a6   :  { %1465 = vmatmul.msk.f32.vlgmr.msra.gmra.mxu3 %vm264_vm10, %v855_v12 }
 0x9aa   :  { %v1009_v53 = vpop.permute.xlu1 %1008  ;;  %v1007_v55 = vpop.permute.xlu0 %1006 }
 0x9ab   :  { %1472 = vmatpush.xpose.msk.msrb.mxu3 %vm264_vm10, %v1009_v53 }
 0x9ae   :  { %1466 = vmatmul.msk.f32.gmra.mxu3 %vm264_vm10, %v2118_v14 }
 0x9af   :  { %1473 = vmatpush.xpose.msk.msrb.mxu3 %vm264_vm10, %v1007_v55 }
 0x9b2   :  { %v1005_v18 = vpop.permute.xlu1 %1004 }
 0x9b6   :  { %1474 = vmatmul.msk.f32.vlgmr.msrb.gmra.mxu3 %vm264_vm10, %v1003_v17 }
 0x9be   :  { %1475 = vmatmul.msk.f32.gmra.mxu3 %vm264_vm10, %v1005_v18 }
 0xa29   :  { %v898_v19 = vpop.f32.mrf.mxu3 }
 0xa2a   :  { %v899_v1 = vadd.f32 %v898_v19, %v1910_v37  ;;  %v1458_v19 = vld [vmem:[%s2308_s8 + $0x20] sm:$0xff] }
 0xa2c   :  { %v904_v3 = vsel %vm296_vm12, %v899_v1, -inf }
 0xa2d   :  { %905 = vmax.xlane.f32.xlu0 %v904_v3  ;;  %v1460_v3 = vld [vmem:[%s2308_s8 + $0x30] sm:$0xff] }
 0xa31   :  { %v901_v21 = vpop.f32.mrf.mxu3 }
 0xa32   :  { %v902_v22 = vadd.f32 %v901_v21, %v1915_v39 }
 0xa34   :  { %v907_v24 = vsel %vm300_vm11, %v902_v22, -inf }
 0xa35   :  { %908 = vmax.xlane.f32.xlu2 %v907_v24 }
 0xa39   :  { %v1035_v25 = vpop.f32.mrf.mxu3 }
 0xa3a   :  { %v1036_v26 = vadd.f32 %v1035_v25, %v1910_v37 }
 0xa3c   :  { %v1041_v58 = vsel %vm296_vm12, %v1036_v26, -inf }
 0xa3d   :  { %1042 = vmax.xlane.f32.xlu1 %v1041_v58 }
 0xa41   :  { %932 = vrot.lane.b32.xlu0 %v855_v12, %s1638_s1  ;;  %v1038_v27 = vpop.f32.mrf.mxu3 }
 0xa42   :  { %v1039_v28 = vadd.f32 %v1038_v27, %v1915_v39 }
 0xa44   :  { %v1044_v29 = vsel %vm300_vm11, %v1039_v28, -inf }
 0xa56   :  { %934 = vrot.lane.b32.xlu1 %v2118_v14, %s1638_s1 }
 0xa80   :  { %1045 = vmax.xlane.f32.xlu1 %v1044_v29 }
 0xaa0   :  { %v906_v30 = vpop.xlane.xlu0 %905 }
 0xaa1   :  { %v910_v31 = vsub.f32 %v899_v1, %v906_v30  ;;  %v1461_v1 = vld [vmem:[%s2308_s8 + $0x38] sm:$0xff] }
 0xaa2   :  { %1125 = vmatpush.msra.mxu1 %v1461_v1 }
 0xaa3   :  { %v912_v0 = vmul.f32 1.442695, %v910_v31 }
 0xaa4   :  { %1126 = vmatpush.msra.mxu1 %v1460_v3  ;;  %v1506_v3 = vld [vmem:[%s2315_s15 + $0xf8] sm:$0xff] }
 0xaa5   :  { %1578 = vpow2.f32 %v912_v0  ;;  %1344 = vmatpush.msra.mxu3 %v1506_v3 }
 0xaa8   :  { %v909_v33 = vpop.xlane.xlu2 %908 }
 0xaa9   :  { %v911_v37 = vsub.f32 %v902_v22, %v909_v33 }
 0xaab   :  { %v1579_v34 = vpop.eup %1578  ;;  %v914_v35 = vmul.f32 1.442695, %v911_v37 }
 0xaac   :  { %v916_v36 = vsel %vm296_vm12, %v1579_v34, 0.0 }
 0xaad   :  { %1580 = vpow2.f32 %v914_v35  ;;  %917 = vadd.xlane.f32.xlu0 %v916_v36 }
 0xab0   :  { %v1043_v40 = vpop.xlane.xlu1 %1042 }
 0xab1   :  { %v1047_v41 = vsub.f32 %v1036_v26, %v1043_v40  ;;  %v1531_v26 = vld [vmem:[%s2309_s9 + $0x1] ss:$0 sm:$0xff] }
 0xab3   :  { %v1581_v42 = vpop.eup %1580  ;;  %v1049_v43 = vmul.f32 1.442695, %v1047_v41  ;;  %v933_v48 = vpop.permute.xlu0 %932 }
 0xab4   :  { %v919_v39 = vsel %vm300_vm11, %v1581_v42, 0.0 }
 0xab5   :  { %1582 = vpow2.f32 %v1049_v43  ;;  %920 = vadd.xlane.f32.xlu2 %v919_v39 }
 0xabb   :  { %v1583_v44 = vpop.eup %1582 }
 0xabc   :  { %v1053_v45 = vsel %vm296_vm12, %v1583_v44, 0.0 }
 0xabd   :  { %1054 = vadd.xlane.f32.xlu2 %v1053_v45 }
 0xac1   :  { %1069 = vrot.lane.b32.xlu0 %v855_v12, %s2338_s5 }
 0xac8   :  { %v935_v47 = vpop.permute.xlu1 %934 }
 0xac9   :  { %1467 = vmatpush.msk.msrb.mxu0 %vm337_vm13, %v935_v47 }
 0xacb   :  { %960 = vmatpush.msrb.mxu0 %v933_v48 }
 0xad5   :  { %1071 = vrot.lane.b32.xlu2 %v2118_v14, %s2338_s5  ;;  %v1459_v14 = vld [vmem:[%s2308_s8 + $0x28] sm:$0xff] }
 0xad6   :  { %988 = vmatpush.msra.mxu2 %v1459_v14 }
 0xad8   :  { %989 = vmatpush.msra.mxu2 %v1458_v19 }
 0xaf3   :  { %v1046_v49 = vpop.xlane.xlu1 %1045 }
 0xaf4   :  { %v1048_v50 = vsub.f32 %v1039_v28, %v1046_v49  ;;  %v1532_v28 = vld [vmem:[%s2310_s10 + $0x1] ss:$0 sm:$0xff]  ;;  %s1640_s10 = smov [#allocation2]  }
 0xaf5   :  { %s1414_s6 = sshll.u32 %s1640_s10, 4  ;;  %s1415_s6 = int_to_ptr.vmem [resolvable:$true] %s1414_s6 }
 0xaf6   :  { %v1051_v51 = vmul.f32 1.442695, %v1048_v50 }
 0xaf8   :  { %1584 = vpow2.f32 %v1051_v51 }
 0xafe   :  { %v1585_v52 = vpop.eup %1584 }
 0xaff   :  { %v1056_v54 = vsel %vm300_vm11, %v1585_v52, 0.0 }
 0xb00   :  { %1057 = vadd.xlane.f32.xlu0 %v1056_v54  ;;  %v1485_v54 = vld [vmem:[%s2313_s13 + $0x28] sm:$0xff] }
 0xb20   :  { %v918_v56 = vpop.xlane.xlu0 %917 }
 0xb21   :  { %1586 = vrcp.f32 %v918_v56 }
 0xb27   :  { %v1587_v57 = vpop.eup %1586 }
 0xb28   :  { %v924_v59 = vmul.f32 %v1587_v57, %v918_v56  ;;  %v921_v60 = vpop.xlane.xlu2 %920  ;;  %v1484_v56 = vld [vmem:[%s2313_s13 + $0x20] sm:$0xff] }
 0xb29   :  { %1588 = vrcp.f32 %v921_v60 }
 0xb2a   :  { %v926_v61 = vsub.f32 2.0, %v924_v59 }
 0xb2c   :  { %v928_v62 = vmul.f32 %v1587_v57, %v926_v61 }
 0xb2e   :  { %v930_v63 = vmul.f32 %v1579_v34, %v928_v62 }
 0xb2f   :  { %v1589_v2 = vpop.eup %1588 }
 0xb30   :  { %v925_v32 = vmul.f32 %v1589_v2, %v921_v60  ;;  %v1055_v5 = vpop.xlane.xlu2 %1054  ;;  %1468 = vmatmul.msk.f32.vlgmr.msrb.gmra.mxu0 %vm296_vm12, %v930_v63 }
 0xb31   :  { %1590 = vrcp.f32 %v1055_v5 }
 0xb32   :  { %v927_v6 = vsub.f32 2.0, %v925_v32 }
 0xb33   :  { %v1070_v11 = vpop.permute.xlu0 %1069 }
 0xb34   :  { %v929_v7 = vmul.f32 %v1589_v2, %v927_v6  ;;  %v1533_v6 = vld [vmem:[%s2311_s11 + $0x1] ss:$0 sm:$0xff] }
 0xb36   :  { %v931_v4 = vmul.f32 %v1581_v42, %v929_v7 }
 0xb37   :  { %v1591_v8 = vpop.eup %1590 }
 0xb38   :  { %v1061_v38 = vmul.f32 %v1591_v8, %v1055_v5  ;;  %v1072_v9 = vpop.permute.xlu2 %1071  ;;  %1469 = vmatmul.msk.f32.gmra.mxu0 %vm296_vm12, %v931_v4 }
 0xb39   :  { %1476 = vmatpush.msk.msra.mxu0 %vm337_vm13, %v1072_v9 }
 0xb3a   :  { %v1063_v10 = vsub.f32 2.0, %v1061_v38 }
 0xb3b   :  { %1097 = vmatpush.msra.mxu0 %v1070_v11 }
 0xb3c   :  { %v1065_v12 = vmul.f32 %v1591_v8, %v1063_v10  ;;  %v1534_v8 = vld [vmem:[%s2312_s12 + $0x1] ss:$0 sm:$0xff] }
 0xb3e   :  { %v1067_v13 = vmul.f32 %v1583_v44, %v1065_v12 }
 0xb40   :  { %1477 = vmatmul.msk.f32.vlgmr.msra.gmra.mxu0 %vm296_vm12, %v1067_v13 }
 0xb73   :  { %v1058_v15 = vpop.xlane.xlu0 %1057 }
 0xb74   :  { %1592 = vrcp.f32 %v1058_v15 }
 0xb7a   :  { %v1593_v16 = vpop.eup %1592 }
 0xb7b   :  { %v1062_v53 = vmul.f32 %v1593_v16, %v1058_v15 }
 0xb7d   :  { %v1064_v55 = vsub.f32 2.0, %v1062_v53 }
 0xb7f   :  { %v1066_v17 = vmul.f32 %v1593_v16, %v1064_v55 }
 0xb81   :  { %v1068_v18 = vmul.f32 %v1585_v52, %v1066_v17  ;;  %v1486_v52 = vld [vmem:[%s2313_s13 + $0x30] sm:$0xff] }
 0xb83   :  { %1478 = vmatmul.msk.f32.gmra.mxu0 %vm296_vm12, %v1068_v18 }
 0xbad   :  { %v962_v21 = vpop.f32.mrf.mxu0 }
 0xbae   :  { %1470 = vmatmul.msk.f32.vlgmr.msra.gmra.mxu2 %vm264_vm10, %v962_v21  ;;  %v2223_v21 = vld [vmem:[%s2314_s14 + $0x1] ss:$0 sm:$0xff] }
 0xbb5   :  { %v965_v22 = vpop.f32.mrf.mxu0 }
 0xbb6   :  { %1471 = vmatmul.msk.f32.gmra.mxu2 %vm264_vm10, %v965_v22  ;;  %v1505_v22 = vld [vmem:[%s2315_s15 + $0xf0] sm:$0xff] }
 0xbb7   :  { %1345 = vmatpush.msra.mxu3 %v1505_v22 }
 0xbbd   :  { %v1099_v24 = vpop.f32.mrf.mxu0 }
 0xbbe   :  { %1479 = vmatmul.msk.f32.vlgmr.msra.gmra.mxu1 %vm264_vm10, %v1099_v24  ;;  %v1504_v24 = vld [vmem:[%s2315_s15 + $0xe8] sm:$0xff] }
 0xbbf   :  { %1346 = vmatpush.msra.mxu3 %v1504_v24 }
 0xc00   :  { %v1102_v25 = vpop.f32.mrf.mxu0 }
 0xc01   :  { %1480 = vmatmul.msk.f32.gmra.mxu1 %vm264_vm10, %v1102_v25 }
 0xc31   :  { %v991_v58 = vpop.f32.mrf.mxu2 }
 0xc32   :  { %v1000_v27 = vadd.f32 %v1531_v26, %v991_v58  ;;  %v1503_v58 = vld [vmem:[%s2315_s15 + $0xe0] sm:$0xff] }
 0xc33   :  { %1347 = vmatpush.msra.mxu3 %v1503_v58 }
 0xc39   :  { %v994_v37 = vpop.f32.mrf.mxu2 }
 0xc3a   :  { %v1001_v34 = vadd.f32 %v1531_v26, %v994_v37 }
 0xc3b   :  { %v1128_v29 = vpop.f32.mrf.mxu1 }
 0xc3c   :  { %v1134_v30 = vadd.f32 %v1128_v29, %v1000_v27 }
 0xc3e   :  { %v1141_v31 = vmul.f32 %v1532_v28, %v1134_v30  ;;  %v1501_v30 = vld [vmem:[%s2315_s15 + $0xd0] sm:$0xff] }
 0xc40   :  { %v2184_v0 = vadd.f32 %v1141_v31, %v2077_v20 }
 0xc42   :  { %v1149_v33 = vsel %vm153_vm1, %v2184_v0, 0.0 }
 0xc43   :  { %1150 = vadd.xlane.f32.xlu2 %v1149_v33  ;;  %v1500_v33 = vld [vmem:[%s2315_s15 + $0xc8] sm:$0xff] }
 0xc7e   :  { %v1131_v35 = vpop.f32.mrf.mxu1 }
 0xc7f   :  { %v1135_v36 = vadd.f32 %v1131_v35, %v1001_v34  ;;  %v1499_v34 = vld [vmem:[%s2315_s15 + $0xc0] sm:$0xff]  ;;  %v1498_v35 = vld [vmem:[%s2315_s15 + $0xb8] sm:$0xff] }
 0xc81   :  { %v1142_v40 = vmul.f32 %v1532_v28, %v1135_v36  ;;  %v1502_v28 = vld [vmem:[%s2315_s15 + $0xd8] sm:$0xff]  ;;  %v1497_v36 = vld [vmem:[%s2315_s15 + $0xb0] sm:$0xff] }
 0xc82   :  { %1348 = vmatpush.msra.mxu3 %v1502_v28 }
 0xc83   :  { %v1144_v41 = vadd.f32 %v1142_v40, %v2082_v23  ;;  %v1487_v23 = vld [vmem:[%s2313_s13 + $0x38] sm:$0xff]  ;;  %v1496_v40 = vld [vmem:[%s2315_s15 + $0xa8] sm:$0xff] }
 0xc84   :  { %1231 = vmatpush.msrb.mxu2 %v1487_v23  ;;  %1349 = vmatpush.msra.mxu3 %v1501_v30 }
 0xc85   :  { %v1152_v42 = vsel %vm157_vm2, %v1144_v41, 0.0 }
 0xc86   :  { %1153 = vadd.xlane.f32.xlu0 %v1152_v42  ;;  %1232 = vmatpush.msrb.mxu2 %v1486_v52  ;;  %v1495_v42 = vld [vmem:[%s2315_s15 + $0xa0] sm:$0xff] }
 0xc87   :  { %1350 = vmatpush.msra.mxu3 %v1500_v33 }
 0xc88   :  { %1233 = vmatpush.msrb.mxu2 %v1485_v54 }
 0xc89   :  { %1351 = vmatpush.msra.mxu3 %v1499_v34 }
 0xc8a   :  { %1234 = vmatpush.msrb.mxu2 %v1484_v56 }
 0xc8b   :  { %1352 = vmatpush.msra.mxu3 %v1498_v35 }
 0xc8d   :  { %1353 = vmatpush.msra.mxu3 %v1497_v36 }
 0xc8f   :  { %1354 = vmatpush.msra.mxu3 %v1496_v40 }
 0xc91   :  { %1355 = vmatpush.msra.mxu3 %v1495_v42 }
 0xcb6   :  { %v1151_v43 = vpop.xlane.xlu2 %1150 }
 0xcb7   :  { %v1155_v39 = vmul.f32 %v1151_v43, %v1846_v46 }
 0xcb9   :  { %v1157_v20 = vsub.f32 %v2184_v0, %v1155_v39  ;;  %v1494_v39 = vld [vmem:[%s2315_s15 + $0x98] sm:$0xff] }
 0xcba   :  { %1356 = vmatpush.msra.mxu3 %v1494_v39 }
 0xcbb   :  { %v1159_v44 = vmul.f32 %v1157_v20, %v1157_v20 }
 0xcbd   :  { %v1161_v45 = vsel %vm153_vm1, %v1159_v44, 0.0 }
 0xcbe   :  { %1162 = vadd.xlane.f32.xlu1 %v1161_v45  ;;  %v1493_v45 = vld [vmem:[%s2315_s15 + $0x90] sm:$0xff] }
 0xcbf   :  { %1357 = vmatpush.msra.mxu3 %v1493_v45 }
 0xcf9   :  { %v1154_v47 = vpop.xlane.xlu0 %1153 }
 0xcfa   :  { %v1156_v48 = vmul.f32 %v1154_v47, %v1846_v46 }
 0xcfc   :  { %v1158_v49 = vsub.f32 %v1144_v41, %v1156_v48 }
 0xcfe   :  { %v1160_v50 = vmul.f32 %v1158_v49, %v1158_v49 }
 0xd00   :  { %v1164_v51 = vsel %vm157_vm2, %v1160_v50, 0.0  ;;  %v1491_v50 = vld [vmem:[%s2315_s15 + $0x80] sm:$0xff] }
 0xd01   :  { %1165 = vadd.xlane.f32.xlu1 %v1164_v51 }
 0xd31   :  { %v1163_v57 = vpop.xlane.xlu1 %1162 }
 0xd32   :  { %v1167_v59 = vmul.f32 %v1163_v57, %v1846_v46 }
 0xd34   :  { %v1169_v60 = vadd.f32 1e-06, %v1167_v59 }
 0xd36   :  { %1594 = vrsqrt.f32 %v1169_v60  ;;  %vm1177_vm10 = vweird.f32 %v1169_v60 }
 0xd3c   :  { %v1595_v61 = vpop.eup %1594 }
 0xd3d   :  { %v1172_v62 = vmul.f32 %v1595_v61, %v1169_v60  ;;  %vm1178_vm2 = vweird.f32 %v1595_v61 }
 0xd3e   :  { %vm1179_vm11 = vmor %vm1177_vm10, %vm1178_vm2 }
 0xd3f   :  { %v1173_v63 = vmul.f32 %v1595_v61, %v1172_v62 }
 0xd41   :  { %v1174_v2 = vmul.f32 0.5, %v1173_v63 }
 0xd43   :  { %v1175_v32 = vsub.f32 1.5, %v1174_v2 }
 0xd45   :  { %v1176_v5 = vmul.f32 %v1595_v61, %v1175_v32 }
 0xd47   :  { %v1180_v7 = vsel %vm1179_vm11, %v1595_v61, %v1176_v5 }
 0xd48   :  { %v1191_v4 = vmul.f32 %v1180_v7, %v1157_v20 }
 0xd4a   :  { %v1196_v38 = vmul.f32 %v1533_v6, %v1191_v4 }
 0xd4c   :  { %v1201_v9 = vadd.f32 %v1534_v8, %v1196_v38 }
 0xd4e   :  { %1489 = vmatmul.msk.f32.vlgmr.msrb.gmra.mxu2 %vm153_vm1, %v1201_v9 }
 0xd74   :  { %v1166_v10 = vpop.xlane.xlu1 %1165 }
 0xd75   :  { %v1168_v11 = vmul.f32 %v1166_v10, %v1846_v46 }
 0xd77   :  { %v1170_v12 = vadd.f32 1e-06, %v1168_v11 }
 0xd79   :  { %1596 = vrsqrt.f32 %v1170_v12  ;;  %vm1187_vm13 = vweird.f32 %v1170_v12 }
 0xd7f   :  { %v1597_v13 = vpop.eup %1596 }
 0xd80   :  { %v1182_v14 = vmul.f32 %v1597_v13, %v1170_v12  ;;  %vm1188_vm12 = vweird.f32 %v1597_v13 }
 0xd81   :  { %vm1189_vm0 = vmor %vm1187_vm13, %vm1188_vm12  ;;  %vm1407_vm13 = vcmask 259077  }
 0xd82   :  { %v1183_v15 = vmul.f32 %v1597_v13, %v1182_v14 }
 0xd84   :  { %v1184_v16 = vmul.f32 0.5, %v1183_v15 }
 0xd86   :  { %v1185_v53 = vsub.f32 1.5, %v1184_v16 }
 0xd88   :  { %v1186_v55 = vmul.f32 %v1597_v13, %v1185_v53 }
 0xd8a   :  { %v1190_v17 = vsel %vm1189_vm0, %v1597_v13, %v1186_v55 }
 0xd8b   :  { %v1192_v18 = vmul.f32 %v1190_v17, %v1158_v49  ;;  %v1492_v49 = vld [vmem:[%s2315_s15 + $0x88] sm:$0xff] }
 0xd8c   :  { %1358 = vmatpush.msra.mxu3 %v1492_v49  ;;  %v1536_v49 = vld [vmem:[%s2316_s16 + $0x1] ss:$0 sm:$0xff] }
 0xd8d   :  { %v1197_v19 = vmul.f32 %v1533_v6, %v1192_v18 }
 0xd8e   :  { %1359 = vmatpush.msra.mxu3 %v1491_v50  ;;  %v1537_v50 = vld [vmem:[%s2317_s17 + $0x1] ss:$0 sm:$0xff] }
 0xd8f   :  { %v1202_v1 = vadd.f32 %v1534_v8, %v1197_v19 }
 0xd91   :  { %1490 = vmatmul.msk.f32.gmra.mxu2 %vm153_vm1, %v1202_v1 }
 0xdd1   :  { %v1236_v25 = vpop.f32.mrf.mxu2 }
 0xdd2   :  { %v2232_v26 = vadd.f32 %v2223_v21, %v1236_v25 }
 0xdd4   :  { %v2238_v27 = vmul.f32 0.70710677, %v2232_v26  ;;  %v1242_v11 = vmul.f32 0.5, %v2232_v26 }
 0xdd6   :  { %v1246_v29 = vand.u32 2147483647, %v2238_v27  ;;  %vm1312_vm7 = vcmp.ge.f32.partialorder %v2238_v27, 0.0 }
 0xdd8   :  { %v1248_v31 = vmul.f32 0.3275911, %v1246_v29  ;;  %v1300_v56 = vsub.f32 0.0, %v1246_v29 }
 0xdda   :  { %v1250_v37 = vadd.f32 1.0, %v1248_v31  ;;  %v1302_v60 = vmul.f32 %v1300_v56, %v1246_v29 }
 0xddc   :  { %1598 = vrcp.f32 %v1250_v37  ;;  %v1263_v44 = vand.u32 2147483648, %v1250_v37  ;;  %v1261_v48 = vand.u32 2147483647, %v1250_v37  ;;  %vm1257_vm4 = vweird.f32 %v1250_v37 }
 0xddd   :  { %v1304_v63 = vmul.f32 1.442695, %v1302_v60 }
 0xdde   :  { %v1264_v23 = vor.u32 1.1754944e-38, %v1263_v44  ;;  %vm1262_vm6 = vcmp.eq.f32.partialorder %v1261_v48, 8.507059e+37 }
 0xddf   :  { %1600 = vpow2.f32 %v1304_v63 }
 0xde2   :  { %v1599_v41 = vpop.eup %1598 }
 0xde3   :  { %v1253_v43 = vmul.f32 %v1599_v41, %v1250_v37  ;;  %vm1258_vm3 = vweird.f32 %v1599_v41 }
 0xde4   :  { %vm1259_vm5 = vmor %vm1257_vm4, %vm1258_vm3 }
 0xde5   :  { %v1254_v20 = vsub.f32 1.0, %v1253_v43  ;;  %v1601_v4 = vpop.eup %1600 }
 0xde7   :  { %v1255_v47 = vmul.f32 %v1599_v41, %v1254_v20 }
 0xde9   :  { %v1256_v51 = vadd.f32 %v1599_v41, %v1255_v47 }
 0xdeb   :  { %v1260_v52 = vsel %vm1259_vm5, %v1599_v41, %v1256_v51 }
 0xdec   :  { %v1265_v54 = vsel %vm1262_vm6, %v1264_v23, %v1260_v52 }
 0xded   :  { %v1282_v57 = vmul.f32 1.0614054, %v1265_v54 }
 0xdef   :  { %v1284_v59 = vadd.f32 -1.4531521, %v1282_v57 }
 0xdf1   :  { %v1286_v61 = vmul.f32 %v1284_v59, %v1265_v54 }
 0xdf3   :  { %v1288_v62 = vadd.f32 1.4214138, %v1286_v61 }
 0xdf5   :  { %v1290_v2 = vmul.f32 %v1288_v62, %v1265_v54 }
 0xdf7   :  { %v1292_v32 = vadd.f32 -0.28449672, %v1290_v2 }
 0xdf9   :  { %v1294_v5 = vmul.f32 %v1292_v32, %v1265_v54 }
 0xdfb   :  { %v1296_v6 = vadd.f32 0.2548296, %v1294_v5 }
 0xdfd   :  { %v1298_v7 = vmul.f32 %v1296_v6, %v1265_v54 }
 0xdff   :  { %v1308_v8 = vmul.f32 %v1601_v4, %v1298_v7 }
 0xe01   :  { %v1310_v38 = vsub.f32 1.0, %v1308_v8 }
 0xe03   :  { %v1314_v9 = vsub.f32 0.0, %v1310_v38 }
 0xe05   :  { %v1316_v10 = vsel %vm1312_vm7, %v1310_v38, %v1314_v9  ;;  %v1538_v9 = vld [vmem:[%s2318_s18] ss:$0 sm:$0xff] }
 0xe06   :  { %v1318_v12 = vadd.f32 1.0, %v1316_v10 }
 0xe08   :  { %v1320_v13 = vmul.f32 %v1318_v12, %v1242_v11 }
 0xe0a   :  { %1360 = vmatmul.f32.vlgmr.msra.gmra.mxu3 %v1320_v13 }
 0xe14   :  { %v1239_v14 = vpop.f32.mrf.mxu2 }
 0xe15   :  { %v1240_v15 = vadd.f32 %v2223_v21, %v1239_v14 }
 0xe17   :  { %v1245_v16 = vmul.f32 0.70710677, %v1240_v15  ;;  %v1243_v45 = vmul.f32 0.5, %v1240_v15 }
 0xe19   :  { %v1247_v53 = vand.u32 2147483647, %v1245_v16  ;;  %vm1313_vm2 = vcmp.ge.f32.partialorder %v1245_v16, 0.0 }
 0xe1b   :  { %v1249_v55 = vmul.f32 0.3275911, %v1247_v53  ;;  %v1301_v27 = vsub.f32 0.0, %v1247_v53 }
 0xe1d   :  { %v1251_v17 = vadd.f32 1.0, %v1249_v55  ;;  %v1303_v30 = vmul.f32 %v1301_v27, %v1247_v53 }
 0xe1f   :  { %1602 = vrcp.f32 %v1251_v17  ;;  %v1278_v3 = vand.u32 2147483648, %v1251_v17  ;;  %v1276_v24 = vand.u32 2147483647, %v1251_v17  ;;  %vm1272_vm9 = vweird.f32 %v1251_v17 }
 0xe20   :  { %v1306_v37 = vmul.f32 1.442695, %v1303_v30 }
 0xe21   :  { %v1279_v26 = vor.u32 1.1754944e-38, %v1278_v3  ;;  %vm1277_vm15 = vcmp.eq.f32.partialorder %v1276_v24, 8.507059e+37 }
 0xe22   :  { %1604 = vpow2.f32 %v1306_v37 }
 0xe25   :  { %v1603_v18 = vpop.eup %1602 }
 0xe26   :  { %v1268_v19 = vmul.f32 %v1603_v18, %v1251_v17  ;;  %vm1273_vm8 = vweird.f32 %v1603_v18 }
 0xe27   :  { %vm1274_vm14 = vmor %vm1272_vm9, %vm1273_vm8 }
 0xe28   :  { %v1269_v1 = vsub.f32 1.0, %v1268_v19  ;;  %v1605_v42 = vpop.eup %1604 }
 0xe2a   :  { %v1270_v22 = vmul.f32 %v1603_v18, %v1269_v1 }
 0xe2c   :  { %v1271_v25 = vadd.f32 %v1603_v18, %v1270_v22 }
 0xe2e   :  { %v1275_v58 = vsel %vm1274_vm14, %v1603_v18, %v1271_v25 }
 0xe2f   :  { %v1280_v21 = vsel %vm1277_vm15, %v1279_v26, %v1275_v58 }
 0xe30   :  { %v1283_v28 = vmul.f32 1.0614054, %v1280_v21 }
 0xe32   :  { %v1285_v29 = vadd.f32 -1.4531521, %v1283_v28 }
 0xe34   :  { %v1287_v31 = vmul.f32 %v1285_v29, %v1280_v21 }
 0xe36   :  { %v1289_v33 = vadd.f32 1.4214138, %v1287_v31 }
 0xe38   :  { %v1291_v34 = vmul.f32 %v1289_v33, %v1280_v21 }
 0xe3a   :  { %v1293_v35 = vadd.f32 -0.28449672, %v1291_v34 }
 0xe3c   :  { %v1295_v36 = vmul.f32 %v1293_v35, %v1280_v21 }
 0xe3e   :  { %v1297_v40 = vadd.f32 0.2548296, %v1295_v36 }
 0xe40   :  { %v1299_v41 = vmul.f32 %v1297_v40, %v1280_v21 }
 0xe42   :  { %v1309_v43 = vmul.f32 %v1605_v42, %v1299_v41 }
 0xe44   :  { %v1311_v39 = vsub.f32 1.0, %v1309_v43 }
 0xe46   :  { %v1315_v20 = vsub.f32 0.0, %v1311_v39 }
 0xe48   :  { %v1317_v44 = vsel %vm1313_vm2, %v1311_v39, %v1315_v20 }
 0xe49   :  { %v1319_v47 = vadd.f32 1.0, %v1317_v44 }
 0xe4b   :  { %v1321_v48 = vmul.f32 %v1319_v47, %v1243_v45 }
 0xe4d   :  { %1363 = vmatmul.f32.gmra.mxu3 %v1321_v48 }
 0xe8d   :  { %v1361_v51 = vpop.f32.mrf.mxu3 }
 0xe8e   :  { %v1362_v23 = vadd.f32 %v1536_v49, %v1361_v51 }
 0xe90   :  { %v1371_v52 = vmul.f32 %v1537_v50, %v1362_v23 }
 0xe92   :  { %v1372_v54 = vadd.f32 %v1371_v52, %v2184_v0 }
 0xe94   :  { %v1375_v56 = vsel %vm153_vm1, %v1372_v54, 0.0 }
 0xe95   :  { %1376 = vadd.xlane.f32.xlu2 %v1375_v56 }
 0xed0   :  { %v1364_v57 = vpop.f32.mrf.mxu3 }
 0xf08   :  { %v1377_v59 = vpop.xlane.xlu2 %1376 }
 0xf09   :  { %v1378_v60 = vmul.f32 %v1377_v59, %v1846_v46 }
 0xf0b   :  { %v1379_v61 = vsub.f32 %v1372_v54, %v1378_v60 }
 0xf0d   :  { %v1380_v62 = vmul.f32 %v1379_v61, %v1379_v61 }
 0xf0f   :  { %v1381_v63 = vsel %vm153_vm1, %v1380_v62, 0.0  ;;  %vm1405_vm1 = vcmask 253952  }
 0xf10   :  { %1382 = vadd.xlane.f32.xlu0 %v1381_v63 }
 0xf83   :  { %v1383_v2 = vpop.xlane.xlu0 %1382 }
 0xf84   :  { %v1384_v32 = vmul.f32 %v1383_v2, %v1846_v46  ;;  %v1539_v46 = vld [vmem:[%s2319_s19] ss:$0 sm:$0xff] }
 0xf86   :  { %v1385_v5 = vadd.f32 1e-06, %v1384_v32 }
 0xf88   :  { %1606 = vrsqrt.f32 %v1385_v5  ;;  %vm1392_vm11 = vweird.f32 %v1385_v5 }
 0xf8e   :  { %v1607_v6 = vpop.eup %1606 }
 0xf8f   :  { %v1387_v7 = vmul.f32 %v1607_v6, %v1385_v5  ;;  %vm1393_vm10 = vweird.f32 %v1607_v6 }
 0xf90   :  { %vm1394_vm12 = vmor %vm1392_vm11, %vm1393_vm10 }
 0xf91   :  { %v1388_v0 = vmul.f32 %v1607_v6, %v1387_v7 }
 0xf93   :  { %v1389_v4 = vmul.f32 0.5, %v1388_v0 }
 0xf95   :  { %v1390_v8 = vsub.f32 1.5, %v1389_v4 }
 0xf97   :  { %v1391_v38 = vmul.f32 %v1607_v6, %v1390_v8 }
 0xf99   :  { %v1395_v10 = vsel %vm1394_vm12, %v1607_v6, %v1391_v38 }
 0xf9a   :  { %v1396_v11 = vmul.f32 %v1395_v10, %v1379_v61 }
 0xf9c   :  { %v1400_v12 = vmul.f32 %v1538_v9, %v1396_v11 }
 0xf9e   :  { %v1404_v13 = vadd.f32 %v1539_v46, %v1400_v12 }
 0xfa0   :  { %1406 = vst.msk [vmem:[#allocation2] sm:$0x1] %vm1405_vm1, %v1404_v13 }
 0xfa1   :  { %1408 = vst.msk [vmem:[#allocation2 - $0x4] sm:$0x20] %vm1407_vm13, %v1404_v13 }
 0xfa2   :  { %1419 = dma.vmem_to_hbm [thread:$0]  %s1415_s6, 32, %s1417_s28, [#allocation3]  }
 0xfa3   :  { %1632 = dma.done.wait [#allocation3], 32  }
 0xfa4   :  { %1633 = vsyncadd [#allocation3], 4294967264 }
 0xfa5   :  { %1424 = vsyncpa [#allocation3], 1 }

</bundles_post_ra>
